<compile_context>
chip_gen: v7x
topology: tpu7x:2x2x1
jax: 0.10.0
libtpu: 0.0.40
codegen_flags: <defaults>
</compile_context>

<pallas_src>
import math
import jax
import jax.numpy as jnp
from jax import lax
from jax.experimental import pallas as pl
from jax.experimental.pallas import tpu as pltpu


# ----------------------------------------------------------------------------
# Fused Pallas kernel: conv + relu + 2x2 maxpool + fc1 + relu + fc2
# ----------------------------------------------------------------------------
def _make_fused_kernel(*, C, F, KH, KW, OW, Ho, Wo):
    OWC = OW * C

    def kernel(xs_ref, wband_ref, bhalf_ref, w1_ref, b1_ref, w2_ref, b2_ref,
               o_ref):
        # xs_ref   : (1, 2, Hh, Wp*C)   padded input rows split by parity
        # wband_ref: (2, KH*KW, OW*C, Wo*F) block-banded conv weights (q = col parity)
        # bhalf_ref: (1, Wo*F)          conv bias tiled over Wo
        # w1_ref   : (Ho, Wo*F, hidden) fc1 weight folded to HWC row layout
        # o_ref    : (1, 1, classes)

        # ---- conv + bias + relu + 2x2/2 maxpool (all VMEM resident) ----
        # acc[p][q][h, w*F+f] = conv preactivation at (oh=2h+p, ow=2w+q, f)
        accs = [[None, None], [None, None]]
        for p in (0, 1):                                  # output-row parity
            for kh in range(KH):
                phase, row0 = (p + kh) % 2, (p + kh) // 2
                for kw in range(KW):
                    win = xs_ref[0, phase, pl.ds(row0, Ho), pl.ds(kw * C, OWC)]
                    for q in (0, 1):                      # output-col parity
                        t = jnp.dot(win, wband_ref[q, kh * KW + kw],
                                    preferred_element_type=jnp.float32)
                        accs[p][q] = t if accs[p][q] is None else accs[p][q] + t
        # max over the 2x2 pooling window, then bias + relu (relu/max commute)
        pool_max = jnp.maximum(jnp.maximum(accs[0][0], accs[0][1]),
                               jnp.maximum(accs[1][0], accs[1][1]))
        pooled = jnp.maximum(pool_max + bhalf_ref[...], 0.0)   # (Ho, Wo*F)

        # ---- fc1 (+ dropout p=0 identity) + relu + fc2 ----
        h = b1_ref[...]                                          # (1, hidden)
        for r in range(Ho):
            h = h + jnp.dot(pooled[r:r + 1, :], w1_ref[r],
                            preferred_element_type=jnp.float32)
        # TODO(synk): nn.Dropout with p>0 in training mode would need
        # pltpu.prng_seed / prng_random_bits here; module default p=0.0 is identity.
        h = jnp.maximum(h, 0.0)
        out = jnp.dot(h, w2_ref[...],
                      preferred_element_type=jnp.float32) + b2_ref[...]
        o_ref[0, :, :] = out

    return kernel


def build_fused_forward(dims, N):
    C, F, KH, KW = dims["C"], dims["F"], dims["KH"], dims["KW"]
    OW, Ho, Wo = dims["OW"], dims["Ho"], dims["Wo"]
    Hh, WpC = dims["Hh"], dims["Wp"] * C
    hidden, classes = dims["hidden"], dims["classes"]

    kernel = _make_fused_kernel(C=C, F=F, KH=KH, KW=KW, OW=OW, Ho=Ho, Wo=Wo)

    return pl.pallas_call(
        kernel,
        out_shape=jax.ShapeDtypeStruct((N, 1, classes), jnp.float32),
        grid=(N,),
        in_specs=[
            pl.BlockSpec((1, 2, Hh, WpC), lambda n: (n, 0, 0, 0)),
            pl.BlockSpec((2, KH * KW, OW * C, Wo * F), lambda n: (0, 0, 0, 0)),
            pl.BlockSpec((1, Wo * F), lambda n: (0, 0)),
            pl.BlockSpec((Ho, Wo * F, hidden), lambda n: (0, 0, 0)),
            pl.BlockSpec((1, hidden), lambda n: (0, 0)),
            pl.BlockSpec((hidden, classes), lambda n: (0, 0)),
            pl.BlockSpec((1, classes), lambda n: (0, 0)),
        ],
        out_specs=pl.BlockSpec((1, 1, classes), lambda n: (n, 0, 0)),
        compiler_params=pltpu.CompilerParams(
            dimension_semantics=("parallel",)),
    )


# ----------------------------------------------------------------------------
# One-time parameter prep (all layout work hoisted out of the forward pass)
# ----------------------------------------------------------------------------
def same_pad_amounts(ih, iw, kh, kw, sh, sw, dh=1, dw=1):
    oh, ow = math.ceil(ih / sh), math.ceil(iw / sw)
    pad_h = max((oh - 1) * sh + (kh - 1) * dh + 1 - ih, 0)
    pad_w = max((ow - 1) * sw + (kw - 1) * dw + 1 - iw, 0)
    return (pad_h // 2, pad_h - pad_h // 2), (pad_w // 2, pad_w - pad_w // 2)


def prep_params(params, cfg):
    conv_w, conv_b, fc1_w, fc1_b, fc2_w, fc2_b = params
    C, H, W = cfg["input_dim"]
    F, _, KH, KW = conv_w.shape
    assert cfg["stride_conv"] == 1 and cfg["pool"] == 2 and cfg["stride_pool"] == 2

    (pad_t, pad_b), (pad_l, pad_r) = same_pad_amounts(H, W, KH, KW, 1, 1)
    Hp, Wp = H + pad_t + pad_b, W + pad_l + pad_r
    OH, OW = Hp - KH + 1, Wp - KW + 1
    assert OH % 2 == 0 and OW % 2 == 0
    Ho, Wo = OH // 2, OW // 2
    Hh = (Hp + (Hp % 2)) // 2
    assert KH // 2 + Ho <= Hh
    hidden, classes = fc1_w.shape[0], fc2_w.shape[0]

    # conv weights -> two block-banded matrices (q = output-column parity).
    base = conv_w.transpose(2, 3, 1, 0).reshape(KH * KW, C, F)       # (k, c, f)
    ow_idx = jnp.arange(OW)
    w_idx = jnp.arange(Wo)
    wbands = []
    for q in (0, 1):
        sel = (ow_idx[None, :] == (2 * w_idx[:, None] + q)).astype(jnp.float32)
        wb = jnp.einsum('kcf,wv->kvcwf', base, sel)                  # (k,OW,C,Wo,F)
        wbands.append(wb.reshape(KH * KW, OW * C, Wo * F))
    wband = jnp.stack(wbands, axis=0)                                # (2,k,OW*C,Wo*F)
    bhalf = jnp.tile(conv_b, Wo).reshape(1, Wo * F)

    # fc1: PyTorch flattens pooled map as CHW; kernel row layout is (h, w*F+f).
    w1 = fc1_w.reshape(hidden, F, Ho, Wo).transpose(2, 3, 1, 0)
    w1 = w1.reshape(Ho, Wo * F, hidden)
    b1 = fc1_b.reshape(1, hidden)
    w2 = fc2_w.T
    b2 = fc2_b.reshape(1, classes)

    dims = dict(C=C, F=F, KH=KH, KW=KW, Hp=Hp, Wp=Wp, OH=OH, OW=OW,
                Ho=Ho, Wo=Wo, Hh=Hh, pad_t=pad_t, pad_b=pad_b,
                pad_l=pad_l, pad_r=pad_r, hidden=hidden, classes=classes)
    return (wband, bhalf, w1, b1, w2, b2), dims


def classification_cnn_forward(x, prepped, dims):
    """x: (N, C, H, W) float32 (PyTorch NCHW convention)."""
    wband, bhalf, w1, b1, w2, b2 = prepped
    N = x.shape[0]
    C, Hp, Wp = dims["C"], dims["Hp"], dims["Wp"]
    # Layout glue only (all compute runs inside the single fused Pallas kernel):
    # NCHW -> NHWC, TF-"SAME" zero pad, flatten (W, C) into lanes, row-parity split.
    xh = jnp.transpose(x, (0, 2, 3, 1)).astype(jnp.float32)
    xp = jnp.pad(xh, ((0, 0), (dims["pad_t"], dims["pad_b"] + (Hp % 2)),
                      (dims["pad_l"], dims["pad_r"]), (0, 0)))
    Hp2 = Hp + (Hp % 2)
    xs = xp.reshape(N, Hp2 // 2, 2, Wp * C).transpose(0, 2, 1, 3)    # (N,2,Hh,Wp*C)

    out = build_fused_forward(dims, N)(xs, wband, bhalf, w1, b1, w2, b2)
    return out.reshape(N, dims["classes"])


# ----------------------------------------------------------------------------
# Deterministic parameter init (matches the PyTorch module's shapes)
# ----------------------------------------------------------------------------
def init_params(cfg, key):
    C, H, W = cfg["input_dim"]
    F, K = cfg["num_filters"], cfg["kernel_size"]
    hidden, classes = cfg["hidden_dim"], cfg["num_classes"]
    pool, sp = cfg["pool"], cfg["stride_pool"]
    Ho = (H - pool) // sp + 1
    Wo = (W - pool) // sp + 1
    flat = F * Ho * Wo

    k = jax.random.split(key, 6)
    fan_in, fan_out = C * K * K, F * K * K
    std = cfg["weight_scale"] * math.sqrt(2.0 / (fan_in + fan_out))
    conv_w = std * jax.random.normal(k[0], (F, C, K, K), jnp.float32)
    cb = 1.0 / math.sqrt(fan_in)
    conv_b = jax.random.uniform(k[1], (F,), jnp.float32, -cb, cb)

    b1 = 1.0 / math.sqrt(flat)
    fc1_w = jax.random.uniform(k[2], (hidden, flat), jnp.float32, -b1, b1)
    fc1_b = jax.random.uniform(k[3], (hidden,), jnp.float32, -b1, b1)
    b2 = 1.0 / math.sqrt(hidden)
    fc2_w = jax.random.uniform(k[4], (classes, hidden), jnp.float32, -b2, b2)
    fc2_b = jax.random.uniform(k[5], (classes,), jnp.float32, -b2, b2)
    return conv_w, conv_b, fc1_w, fc1_b, fc2_w, fc2_b


def reference_forward(x, params, cfg):
    """Pure-JAX reference mirroring the PyTorch module semantics."""
    conv_w, conv_b, fc1_w, fc1_b, fc2_w, fc2_b = params
    N, C, H, W = x.shape
    F, _, KH, KW = conv_w.shape
    sh = sw = cfg["stride_conv"]
    pool, sp = cfg["pool"], cfg["stride_pool"]
    (pt, pb), (pleft, pright) = same_pad_amounts(H, W, KH, KW, sh, sw)
    xp = jnp.pad(x, ((0, 0), (0, 0), (pt, pb), (pleft, pright)))
    y = lax.conv_general_dilated(xp, conv_w, (sh, sw), "VALID",
                                 dimension_numbers=("NCHW", "OIHW", "NCHW"))
    y = jnp.maximum(y + conv_b[None, :, None, None], 0.0)
    OH, OW = y.shape[2], y.shape[3]
    Ho, Wo = (OH - pool) // sp + 1, (OW - pool) // sp + 1
    yw = y[:, :, :sp * Ho, :sp * Wo].reshape(N, F, Ho, sp, Wo, sp)
    yp = yw.max(axis=(3, 5))
    flat = yp.reshape(N, -1)                                 # CHW flatten, like torch
    h = jnp.maximum(flat @ fc1_w.T + fc1_b, 0.0)
    return h @ fc2_w.T + fc2_b


if __name__ == "__main__":
    cfg = dict(input_dim=(4, 16, 16), num_filters=8, kernel_size=3,
               stride_conv=1, weight_scale=0.001, pool=2, stride_pool=2,
               hidden_dim=32, num_classes=10, dropout=0.0)

    key = jax.random.PRNGKey(0)
    kx, kp = jax.random.split(key)
    x = jax.random.normal(kx, (2, 4, 16, 16), jnp.float32)   # NCHW, like PyTorch
    params = init_params(cfg, kp)
    prepped, dims = prep_params(params, cfg)

    fwd = jax.jit(lambda xx: classification_cnn_forward(xx, prepped, dims))
    out = jax.block_until_ready(fwd(x))

    ref = reference_forward(x, params, cfg)
    assert out.shape == (2, cfg["num_classes"])
    assert jnp.allclose(out, ref, atol=1e-4, rtol=1e-4), (out, ref)

    print("KERNEL_OK")
</pallas_src>

<mosaic_0001>
module attributes {stable_mosaic.version = 11 : i64} {
  func.func @kernel(%arg0: i32, %arg1: memref<1x2x9x72xf32, #tpu.memory_space<vmem>>, %arg2: memref<2x9x64x64xf32, #tpu.memory_space<vmem>>, %arg3: memref<1x64xf32, #tpu.memory_space<vmem>>, %arg4: memref<8x64x32xf32, #tpu.memory_space<vmem>>, %arg5: memref<1x32xf32, #tpu.memory_space<vmem>>, %arg6: memref<32x10xf32, #tpu.memory_space<vmem>>, %arg7: memref<1x10xf32, #tpu.memory_space<vmem>>, %arg8: memref<1x1x10xf32, #tpu.memory_space<vmem>>) attributes {dimension_semantics = [#tpu.dimension_semantics<parallel>], iteration_bounds = array<i64: 2>, scalar_prefetch = 0 : i64, scratch_operands = 0 : i64, tpu.core_type = #tpu.core_type<tc>, window_params = [{transform_indices = @transform_0, window_bounds = array<i64: 1, 2, 9, 72>}, {pipeline_mode = #tpu.pipeline_mode<synchronous>, transform_indices = @transform_1, window_bounds = array<i64: 2, 9, 64, 64>}, {pipeline_mode = #tpu.pipeline_mode<synchronous>, transform_indices = @transform_2, window_bounds = array<i64: 1, 64>}, {pipeline_mode = #tpu.pipeline_mode<synchronous>, transform_indices = @transform_3, window_bounds = array<i64: 8, 64, 32>}, {pipeline_mode = #tpu.pipeline_mode<synchronous>, transform_indices = @transform_4, window_bounds = array<i64: 1, 32>}, {pipeline_mode = #tpu.pipeline_mode<synchronous>, transform_indices = @transform_5, window_bounds = array<i64: 32, 10>}, {pipeline_mode = #tpu.pipeline_mode<synchronous>, transform_indices = @transform_6, window_bounds = array<i64: 1, 10>}, {transform_indices = @transform_7, window_bounds = array<i64: 1, 1, 10>}]} {
    %c0 = arith.constant 0 : index
    %c0_0 = arith.constant 0 : index
    %c0_1 = arith.constant 0 : index
    %c0_2 = arith.constant 0 : index
    %0 = vector.load %arg1[%c0, %c0_0, %c0_1, %c0_2] : memref<1x2x9x72xf32, #tpu.memory_space<vmem>>, vector<1x1x8x64xf32>
    %1 = vector.shape_cast %0 : vector<1x1x8x64xf32> to vector<8x64xf32>
    %c0_3 = arith.constant 0 : index
    %c0_4 = arith.constant 0 : index
    %c0_5 = arith.constant 0 : index
    %c0_6 = arith.constant 0 : index
    %2 = vector.load %arg2[%c0_3, %c0_4, %c0_5, %c0_6] : memref<2x9x64x64xf32, #tpu.memory_space<vmem>>, vector<1x1x64x64xf32>
    %3 = vector.shape_cast %2 : vector<1x1x64x64xf32> to vector<64x64xf32>
    %cst = arith.constant dense<0.000000e+00> : vector<8x64xf32>
    %4 = tpu.matmul %1, %3, %cst {dimension_numbers = #tpu.dot_dimension_numbers<[1], [0], [0], [1], [0, 0, 1, 1], [], []>} : vector<8x64xf32>, vector<64x64xf32>, vector<8x64xf32> -> vector<8x64xf32>
    %c1 = arith.constant 1 : index
    %c0_7 = arith.constant 0 : index
    %c0_8 = arith.constant 0 : index
    %c0_9 = arith.constant 0 : index
    %5 = vector.load %arg2[%c1, %c0_7, %c0_8, %c0_9] : memref<2x9x64x64xf32, #tpu.memory_space<vmem>>, vector<1x1x64x64xf32>
    %6 = vector.shape_cast %5 : vector<1x1x64x64xf32> to vector<64x64xf32>
    %cst_10 = arith.constant dense<0.000000e+00> : vector<8x64xf32>
    %7 = tpu.matmul %1, %6, %cst_10 {dimension_numbers = #tpu.dot_dimension_numbers<[1], [0], [0], [1], [0, 0, 1, 1], [], []>} : vector<8x64xf32>, vector<64x64xf32>, vector<8x64xf32> -> vector<8x64xf32>
    %c0_11 = arith.constant 0 : index
    %c0_12 = arith.constant 0 : index
    %c0_13 = arith.constant 0 : index
    %c4 = arith.constant 4 : index
    %8 = vector.load %arg1[%c0_11, %c0_12, %c0_13, %c4] : memref<1x2x9x72xf32, #tpu.memory_space<vmem>>, vector<1x1x8x64xf32>
    %9 = vector.shape_cast %8 : vector<1x1x8x64xf32> to vector<8x64xf32>
    %c0_14 = arith.constant 0 : index
    %c1_15 = arith.constant 1 : index
    %c0_16 = arith.constant 0 : index
    %c0_17 = arith.constant 0 : index
    %10 = vector.load %arg2[%c0_14, %c1_15, %c0_16, %c0_17] : memref<2x9x64x64xf32, #tpu.memory_space<vmem>>, vector<1x1x64x64xf32>
    %11 = vector.shape_cast %10 : vector<1x1x64x64xf32> to vector<64x64xf32>
    %cst_18 = arith.constant dense<0.000000e+00> : vector<8x64xf32>
    %12 = tpu.matmul %9, %11, %cst_18 {dimension_numbers = #tpu.dot_dimension_numbers<[1], [0], [0], [1], [0, 0, 1, 1], [], []>} : vector<8x64xf32>, vector<64x64xf32>, vector<8x64xf32> -> vector<8x64xf32>
    %13 = arith.addf %4, %12 : vector<8x64xf32>
    %c1_19 = arith.constant 1 : index
    %c1_20 = arith.constant 1 : index
    %c0_21 = arith.constant 0 : index
    %c0_22 = arith.constant 0 : index
    %14 = vector.load %arg2[%c1_19, %c1_20, %c0_21, %c0_22] : memref<2x9x64x64xf32, #tpu.memory_space<vmem>>, vector<1x1x64x64xf32>
    %15 = vector.shape_cast %14 : vector<1x1x64x64xf32> to vector<64x64xf32>
    %cst_23 = arith.constant dense<0.000000e+00> : vector<8x64xf32>
    %16 = tpu.matmul %9, %15, %cst_23 {dimension_numbers = #tpu.dot_dimension_numbers<[1], [0], [0], [1], [0, 0, 1, 1], [], []>} : vector<8x64xf32>, vector<64x64xf32>, vector<8x64xf32> -> vector<8x64xf32>
    %17 = arith.addf %7, %16 : vector<8x64xf32>
    %c0_24 = arith.constant 0 : index
    %c0_25 = arith.constant 0 : index
    %c0_26 = arith.constant 0 : index
    %c8 = arith.constant 8 : index
    %18 = vector.load %arg1[%c0_24, %c0_25, %c0_26, %c8] : memref<1x2x9x72xf32, #tpu.memory_space<vmem>>, vector<1x1x8x64xf32>
    %19 = vector.shape_cast %18 : vector<1x1x8x64xf32> to vector<8x64xf32>
    %c0_27 = arith.constant 0 : index
    %c2 = arith.constant 2 : index
    %c0_28 = arith.constant 0 : index
    %c0_29 = arith.constant 0 : index
    %20 = vector.load %arg2[%c0_27, %c2, %c0_28, %c0_29] : memref<2x9x64x64xf32, #tpu.memory_space<vmem>>, vector<1x1x64x64xf32>
    %21 = vector.shape_cast %20 : vector<1x1x64x64xf32> to vector<64x64xf32>
    %cst_30 = arith.constant dense<0.000000e+00> : vector<8x64xf32>
    %22 = tpu.matmul %19, %21, %cst_30 {dimension_numbers = #tpu.dot_dimension_numbers<[1], [0], [0], [1], [0, 0, 1, 1], [], []>} : vector<8x64xf32>, vector<64x64xf32>, vector<8x64xf32> -> vector<8x64xf32>
    %23 = arith.addf %13, %22 : vector<8x64xf32>
    %c1_31 = arith.constant 1 : index
    %c2_32 = arith.constant 2 : index
    %c0_33 = arith.constant 0 : index
    %c0_34 = arith.constant 0 : index
    %24 = vector.load %arg2[%c1_31, %c2_32, %c0_33, %c0_34] : memref<2x9x64x64xf32, #tpu.memory_space<vmem>>, vector<1x1x64x64xf32>
    %25 = vector.shape_cast %24 : vector<1x1x64x64xf32> to vector<64x64xf32>
    %cst_35 = arith.constant dense<0.000000e+00> : vector<8x64xf32>
    %26 = tpu.matmul %19, %25, %cst_35 {dimension_numbers = #tpu.dot_dimension_numbers<[1], [0], [0], [1], [0, 0, 1, 1], [], []>} : vector<8x64xf32>, vector<64x64xf32>, vector<8x64xf32> -> vector<8x64xf32>
    %27 = arith.addf %17, %26 : vector<8x64xf32>
    %c0_36 = arith.constant 0 : index
    %c1_37 = arith.constant 1 : index
    %c0_38 = arith.constant 0 : index
    %c0_39 = arith.constant 0 : index
    %28 = vector.load %arg1[%c0_36, %c1_37, %c0_38, %c0_39] : memref<1x2x9x72xf32, #tpu.memory_space<vmem>>, vector<1x1x8x64xf32>
    %29 = vector.shape_cast %28 : vector<1x1x8x64xf32> to vector<8x64xf32>
    %c0_40 = arith.constant 0 : index
    %c3 = arith.constant 3 : index
    %c0_41 = arith.constant 0 : index
    %c0_42 = arith.constant 0 : index
    %30 = vector.load %arg2[%c0_40, %c3, %c0_41, %c0_42] : memref<2x9x64x64xf32, #tpu.memory_space<vmem>>, vector<1x1x64x64xf32>
    %31 = vector.shape_cast %30 : vector<1x1x64x64xf32> to vector<64x64xf32>
    %cst_43 = arith.constant dense<0.000000e+00> : vector<8x64xf32>
    %32 = tpu.matmul %29, %31, %cst_43 {dimension_numbers = #tpu.dot_dimension_numbers<[1], [0], [0], [1], [0, 0, 1, 1], [], []>} : vector<8x64xf32>, vector<64x64xf32>, vector<8x64xf32> -> vector<8x64xf32>
    %33 = arith.addf %23, %32 : vector<8x64xf32>
    %c1_44 = arith.constant 1 : index
    %c3_45 = arith.constant 3 : index
    %c0_46 = arith.constant 0 : index
    %c0_47 = arith.constant 0 : index
    %34 = vector.load %arg2[%c1_44, %c3_45, %c0_46, %c0_47] : memref<2x9x64x64xf32, #tpu.memory_space<vmem>>, vector<1x1x64x64xf32>
    %35 = vector.shape_cast %34 : vector<1x1x64x64xf32> to vector<64x64xf32>
    %cst_48 = arith.constant dense<0.000000e+00> : vector<8x64xf32>
    %36 = tpu.matmul %29, %35, %cst_48 {dimension_numbers = #tpu.dot_dimension_numbers<[1], [0], [0], [1], [0, 0, 1, 1], [], []>} : vector<8x64xf32>, vector<64x64xf32>, vector<8x64xf32> -> vector<8x64xf32>
    %37 = arith.addf %27, %36 : vector<8x64xf32>
    %c0_49 = arith.constant 0 : index
    %c1_50 = arith.constant 1 : index
    %c0_51 = arith.constant 0 : index
    %c4_52 = arith.constant 4 : index
    %38 = vector.load %arg1[%c0_49, %c1_50, %c0_51, %c4_52] : memref<1x2x9x72xf32, #tpu.memory_space<vmem>>, vector<1x1x8x64xf32>
    %39 = vector.shape_cast %38 : vector<1x1x8x64xf32> to vector<8x64xf32>
    %c0_53 = arith.constant 0 : index
    %c4_54 = arith.constant 4 : index
    %c0_55 = arith.constant 0 : index
    %c0_56 = arith.constant 0 : index
    %40 = vector.load %arg2[%c0_53, %c4_54, %c0_55, %c0_56] : memref<2x9x64x64xf32, #tpu.memory_space<vmem>>, vector<1x1x64x64xf32>
    %41 = vector.shape_cast %40 : vector<1x1x64x64xf32> to vector<64x64xf32>
    %cst_57 = arith.constant dense<0.000000e+00> : vector<8x64xf32>
    %42 = tpu.matmul %39, %41, %cst_57 {dimension_numbers = #tpu.dot_dimension_numbers<[1], [0], [0], [1], [0, 0, 1, 1], [], []>} : vector<8x64xf32>, vector<64x64xf32>, vector<8x64xf32> -> vector<8x64xf32>
    %43 = arith.addf %33, %42 : vector<8x64xf32>
    %c1_58 = arith.constant 1 : index
    %c4_59 = arith.constant 4 : index
    %c0_60 = arith.constant 0 : index
    %c0_61 = arith.constant 0 : index
    %44 = vector.load %arg2[%c1_58, %c4_59, %c0_60, %c0_61] : memref<2x9x64x64xf32, #tpu.memory_space<vmem>>, vector<1x1x64x64xf32>
    %45 = vector.shape_cast %44 : vector<1x1x64x64xf32> to vector<64x64xf32>
    %cst_62 = arith.constant dense<0.000000e+00> : vector<8x64xf32>
    %46 = tpu.matmul %39, %45, %cst_62 {dimension_numbers = #tpu.dot_dimension_numbers<[1], [0], [0], [1], [0, 0, 1, 1], [], []>} : vector<8x64xf32>, vector<64x64xf32>, vector<8x64xf32> -> vector<8x64xf32>
    %47 = arith.addf %37, %46 : vector<8x64xf32>
    %c0_63 = arith.constant 0 : index
    %c1_64 = arith.constant 1 : index
    %c0_65 = arith.constant 0 : index
    %c8_66 = arith.constant 8 : index
    %48 = vector.load %arg1[%c0_63, %c1_64, %c0_65, %c8_66] : memref<1x2x9x72xf32, #tpu.memory_space<vmem>>, vector<1x1x8x64xf32>
    %49 = vector.shape_cast %48 : vector<1x1x8x64xf32> to vector<8x64xf32>
    %c0_67 = arith.constant 0 : index
    %c5 = arith.constant 5 : index
    %c0_68 = arith.constant 0 : index
    %c0_69 = arith.constant 0 : index
    %50 = vector.load %arg2[%c0_67, %c5, %c0_68, %c0_69] : memref<2x9x64x64xf32, #tpu.memory_space<vmem>>, vector<1x1x64x64xf32>
    %51 = vector.shape_cast %50 : vector<1x1x64x64xf32> to vector<64x64xf32>
    %cst_70 = arith.constant dense<0.000000e+00> : vector<8x64xf32>
    %52 = tpu.matmul %49, %51, %cst_70 {dimension_numbers = #tpu.dot_dimension_numbers<[1], [0], [0], [1], [0, 0, 1, 1], [], []>} : vector<8x64xf32>, vector<64x64xf32>, vector<8x64xf32> -> vector<8x64xf32>
    %53 = arith.addf %43, %52 : vector<8x64xf32>
    %c1_71 = arith.constant 1 : index
    %c5_72 = arith.constant 5 : index
    %c0_73 = arith.constant 0 : index
    %c0_74 = arith.constant 0 : index
    %54 = vector.load %arg2[%c1_71, %c5_72, %c0_73, %c0_74] : memref<2x9x64x64xf32, #tpu.memory_space<vmem>>, vector<1x1x64x64xf32>
    %55 = vector.shape_cast %54 : vector<1x1x64x64xf32> to vector<64x64xf32>
    %cst_75 = arith.constant dense<0.000000e+00> : vector<8x64xf32>
    %56 = tpu.matmul %49, %55, %cst_75 {dimension_numbers = #tpu.dot_dimension_numbers<[1], [0], [0], [1], [0, 0, 1, 1], [], []>} : vector<8x64xf32>, vector<64x64xf32>, vector<8x64xf32> -> vector<8x64xf32>
    %57 = arith.addf %47, %56 : vector<8x64xf32>
    %c0_76 = arith.constant 0 : index
    %c0_77 = arith.constant 0 : index
    %c1_78 = arith.constant 1 : index
    %c0_79 = arith.constant 0 : index
    %58 = vector.load %arg1[%c0_76, %c0_77, %c1_78, %c0_79] : memref<1x2x9x72xf32, #tpu.memory_space<vmem>>, vector<1x1x8x64xf32>
    %59 = vector.shape_cast %58 : vector<1x1x8x64xf32> to vector<8x64xf32>
    %c0_80 = arith.constant 0 : index
    %c6 = arith.constant 6 : index
    %c0_81 = arith.constant 0 : index
    %c0_82 = arith.constant 0 : index
    %60 = vector.load %arg2[%c0_80, %c6, %c0_81, %c0_82] : memref<2x9x64x64xf32, #tpu.memory_space<vmem>>, vector<1x1x64x64xf32>
    %61 = vector.shape_cast %60 : vector<1x1x64x64xf32> to vector<64x64xf32>
    %cst_83 = arith.constant dense<0.000000e+00> : vector<8x64xf32>
    %62 = tpu.matmul %59, %61, %cst_83 {dimension_numbers = #tpu.dot_dimension_numbers<[1], [0], [0], [1], [0, 0, 1, 1], [], []>} : vector<8x64xf32>, vector<64x64xf32>, vector<8x64xf32> -> vector<8x64xf32>
    %63 = arith.addf %53, %62 : vector<8x64xf32>
    %c1_84 = arith.constant 1 : index
    %c6_85 = arith.constant 6 : index
    %c0_86 = arith.constant 0 : index
    %c0_87 = arith.constant 0 : index
    %64 = vector.load %arg2[%c1_84, %c6_85, %c0_86, %c0_87] : memref<2x9x64x64xf32, #tpu.memory_space<vmem>>, vector<1x1x64x64xf32>
    %65 = vector.shape_cast %64 : vector<1x1x64x64xf32> to vector<64x64xf32>
    %cst_88 = arith.constant dense<0.000000e+00> : vector<8x64xf32>
    %66 = tpu.matmul %59, %65, %cst_88 {dimension_numbers = #tpu.dot_dimension_numbers<[1], [0], [0], [1], [0, 0, 1, 1], [], []>} : vector<8x64xf32>, vector<64x64xf32>, vector<8x64xf32> -> vector<8x64xf32>
    %67 = arith.addf %57, %66 : vector<8x64xf32>
    %c0_89 = arith.constant 0 : index
    %c0_90 = arith.constant 0 : index
    %c1_91 = arith.constant 1 : index
    %c4_92 = arith.constant 4 : index
    %68 = vector.load %arg1[%c0_89, %c0_90, %c1_91, %c4_92] : memref<1x2x9x72xf32, #tpu.memory_space<vmem>>, vector<1x1x8x64xf32>
    %69 = vector.shape_cast %68 : vector<1x1x8x64xf32> to vector<8x64xf32>
    %c0_93 = arith.constant 0 : index
    %c7 = arith.constant 7 : index
    %c0_94 = arith.constant 0 : index
    %c0_95 = arith.constant 0 : index
    %70 = vector.load %arg2[%c0_93, %c7, %c0_94, %c0_95] : memref<2x9x64x64xf32, #tpu.memory_space<vmem>>, vector<1x1x64x64xf32>
    %71 = vector.shape_cast %70 : vector<1x1x64x64xf32> to vector<64x64xf32>
    %cst_96 = arith.constant dense<0.000000e+00> : vector<8x64xf32>
    %72 = tpu.matmul %69, %71, %cst_96 {dimension_numbers = #tpu.dot_dimension_numbers<[1], [0], [0], [1], [0, 0, 1, 1], [], []>} : vector<8x64xf32>, vector<64x64xf32>, vector<8x64xf32> -> vector<8x64xf32>
    %73 = arith.addf %63, %72 : vector<8x64xf32>
    %c1_97 = arith.constant 1 : index
    %c7_98 = arith.constant 7 : index
    %c0_99 = arith.constant 0 : index
    %c0_100 = arith.constant 0 : index
    %74 = vector.load %arg2[%c1_97, %c7_98, %c0_99, %c0_100] : memref<2x9x64x64xf32, #tpu.memory_space<vmem>>, vector<1x1x64x64xf32>
    %75 = vector.shape_cast %74 : vector<1x1x64x64xf32> to vector<64x64xf32>
    %cst_101 = arith.constant dense<0.000000e+00> : vector<8x64xf32>
    %76 = tpu.matmul %69, %75, %cst_101 {dimension_numbers = #tpu.dot_dimension_numbers<[1], [0], [0], [1], [0, 0, 1, 1], [], []>} : vector<8x64xf32>, vector<64x64xf32>, vector<8x64xf32> -> vector<8x64xf32>
    %77 = arith.addf %67, %76 : vector<8x64xf32>
    %c0_102 = arith.constant 0 : index
    %c0_103 = arith.constant 0 : index
    %c1_104 = arith.constant 1 : index
    %c8_105 = arith.constant 8 : index
    %78 = vector.load %arg1[%c0_102, %c0_103, %c1_104, %c8_105] : memref<1x2x9x72xf32, #tpu.memory_space<vmem>>, vector<1x1x8x64xf32>
    %79 = vector.shape_cast %78 : vector<1x1x8x64xf32> to vector<8x64xf32>
    %c0_106 = arith.constant 0 : index
    %c8_107 = arith.constant 8 : index
    %c0_108 = arith.constant 0 : index
    %c0_109 = arith.constant 0 : index
    %80 = vector.load %arg2[%c0_106, %c8_107, %c0_108, %c0_109] : memref<2x9x64x64xf32, #tpu.memory_space<vmem>>, vector<1x1x64x64xf32>
    %81 = vector.shape_cast %80 : vector<1x1x64x64xf32> to vector<64x64xf32>
    %cst_110 = arith.constant dense<0.000000e+00> : vector<8x64xf32>
    %82 = tpu.matmul %79, %81, %cst_110 {dimension_numbers = #tpu.dot_dimension_numbers<[1], [0], [0], [1], [0, 0, 1, 1], [], []>} : vector<8x64xf32>, vector<64x64xf32>, vector<8x64xf32> -> vector<8x64xf32>
    %83 = arith.addf %73, %82 : vector<8x64xf32>
    %c1_111 = arith.constant 1 : index
    %c8_112 = arith.constant 8 : index
    %c0_113 = arith.constant 0 : index
    %c0_114 = arith.constant 0 : index
    %84 = vector.load %arg2[%c1_111, %c8_112, %c0_113, %c0_114] : memref<2x9x64x64xf32, #tpu.memory_space<vmem>>, vector<1x1x64x64xf32>
    %85 = vector.shape_cast %84 : vector<1x1x64x64xf32> to vector<64x64xf32>
    %cst_115 = arith.constant dense<0.000000e+00> : vector<8x64xf32>
    %86 = tpu.matmul %79, %85, %cst_115 {dimension_numbers = #tpu.dot_dimension_numbers<[1], [0], [0], [1], [0, 0, 1, 1], [], []>} : vector<8x64xf32>, vector<64x64xf32>, vector<8x64xf32> -> vector<8x64xf32>
    %87 = arith.addf %77, %86 : vector<8x64xf32>
    %c0_116 = arith.constant 0 : index
    %c1_117 = arith.constant 1 : index
    %c0_118 = arith.constant 0 : index
    %c0_119 = arith.constant 0 : index
    %88 = vector.load %arg1[%c0_116, %c1_117, %c0_118, %c0_119] : memref<1x2x9x72xf32, #tpu.memory_space<vmem>>, vector<1x1x8x64xf32>
    %89 = vector.shape_cast %88 : vector<1x1x8x64xf32> to vector<8x64xf32>
    %c0_120 = arith.constant 0 : index
    %c0_121 = arith.constant 0 : index
    %c0_122 = arith.constant 0 : index
    %c0_123 = arith.constant 0 : index
    %90 = vector.load %arg2[%c0_120, %c0_121, %c0_122, %c0_123] : memref<2x9x64x64xf32, #tpu.memory_space<vmem>>, vector<1x1x64x64xf32>
    %91 = vector.shape_cast %90 : vector<1x1x64x64xf32> to vector<64x64xf32>
    %cst_124 = arith.constant dense<0.000000e+00> : vector<8x64xf32>
    %92 = tpu.matmul %89, %91, %cst_124 {dimension_numbers = #tpu.dot_dimension_numbers<[1], [0], [0], [1], [0, 0, 1, 1], [], []>} : vector<8x64xf32>, vector<64x64xf32>, vector<8x64xf32> -> vector<8x64xf32>
    %c1_125 = arith.constant 1 : index
    %c0_126 = arith.constant 0 : index
    %c0_127 = arith.constant 0 : index
    %c0_128 = arith.constant 0 : index
    %93 = vector.load %arg2[%c1_125, %c0_126, %c0_127, %c0_128] : memref<2x9x64x64xf32, #tpu.memory_space<vmem>>, vector<1x1x64x64xf32>
    %94 = vector.shape_cast %93 : vector<1x1x64x64xf32> to vector<64x64xf32>
    %cst_129 = arith.constant dense<0.000000e+00> : vector<8x64xf32>
    %95 = tpu.matmul %89, %94, %cst_129 {dimension_numbers = #tpu.dot_dimension_numbers<[1], [0], [0], [1], [0, 0, 1, 1], [], []>} : vector<8x64xf32>, vector<64x64xf32>, vector<8x64xf32> -> vector<8x64xf32>
    %c0_130 = arith.constant 0 : index
    %c1_131 = arith.constant 1 : index
    %c0_132 = arith.constant 0 : index
    %c4_133 = arith.constant 4 : index
    %96 = vector.load %arg1[%c0_130, %c1_131, %c0_132, %c4_133] : memref<1x2x9x72xf32, #tpu.memory_space<vmem>>, vector<1x1x8x64xf32>
    %97 = vector.shape_cast %96 : vector<1x1x8x64xf32> to vector<8x64xf32>
    %c0_134 = arith.constant 0 : index
    %c1_135 = arith.constant 1 : index
    %c0_136 = arith.constant 0 : index
    %c0_137 = arith.constant 0 : index
    %98 = vector.load %arg2[%c0_134, %c1_135, %c0_136, %c0_137] : memref<2x9x64x64xf32, #tpu.memory_space<vmem>>, vector<1x1x64x64xf32>
    %99 = vector.shape_cast %98 : vector<1x1x64x64xf32> to vector<64x64xf32>
    %cst_138 = arith.constant dense<0.000000e+00> : vector<8x64xf32>
    %100 = tpu.matmul %97, %99, %cst_138 {dimension_numbers = #tpu.dot_dimension_numbers<[1], [0], [0], [1], [0, 0, 1, 1], [], []>} : vector<8x64xf32>, vector<64x64xf32>, vector<8x64xf32> -> vector<8x64xf32>
    %101 = arith.addf %92, %100 : vector<8x64xf32>
    %c1_139 = arith.constant 1 : index
    %c1_140 = arith.constant 1 : index
    %c0_141 = arith.constant 0 : index
    %c0_142 = arith.constant 0 : index
    %102 = vector.load %arg2[%c1_139, %c1_140, %c0_141, %c0_142] : memref<2x9x64x64xf32, #tpu.memory_space<vmem>>, vector<1x1x64x64xf32>
    %103 = vector.shape_cast %102 : vector<1x1x64x64xf32> to vector<64x64xf32>
    %cst_143 = arith.constant dense<0.000000e+00> : vector<8x64xf32>
    %104 = tpu.matmul %97, %103, %cst_143 {dimension_numbers = #tpu.dot_dimension_numbers<[1], [0], [0], [1], [0, 0, 1, 1], [], []>} : vector<8x64xf32>, vector<64x64xf32>, vector<8x64xf32> -> vector<8x64xf32>
    %105 = arith.addf %95, %104 : vector<8x64xf32>
    %c0_144 = arith.constant 0 : index
    %c1_145 = arith.constant 1 : index
    %c0_146 = arith.constant 0 : index
    %c8_147 = arith.constant 8 : index
    %106 = vector.load %arg1[%c0_144, %c1_145, %c0_146, %c8_147] : memref<1x2x9x72xf32, #tpu.memory_space<vmem>>, vector<1x1x8x64xf32>
    %107 = vector.shape_cast %106 : vector<1x1x8x64xf32> to vector<8x64xf32>
    %c0_148 = arith.constant 0 : index
    %c2_149 = arith.constant 2 : index
    %c0_150 = arith.constant 0 : index
    %c0_151 = arith.constant 0 : index
    %108 = vector.load %arg2[%c0_148, %c2_149, %c0_150, %c0_151] : memref<2x9x64x64xf32, #tpu.memory_space<vmem>>, vector<1x1x64x64xf32>
    %109 = vector.shape_cast %108 : vector<1x1x64x64xf32> to vector<64x64xf32>
    %cst_152 = arith.constant dense<0.000000e+00> : vector<8x64xf32>
    %110 = tpu.matmul %107, %109, %cst_152 {dimension_numbers = #tpu.dot_dimension_numbers<[1], [0], [0], [1], [0, 0, 1, 1], [], []>} : vector<8x64xf32>, vector<64x64xf32>, vector<8x64xf32> -> vector<8x64xf32>
    %111 = arith.addf %101, %110 : vector<8x64xf32>
    %c1_153 = arith.constant 1 : index
    %c2_154 = arith.constant 2 : index
    %c0_155 = arith.constant 0 : index
    %c0_156 = arith.constant 0 : index
    %112 = vector.load %arg2[%c1_153, %c2_154, %c0_155, %c0_156] : memref<2x9x64x64xf32, #tpu.memory_space<vmem>>, vector<1x1x64x64xf32>
    %113 = vector.shape_cast %112 : vector<1x1x64x64xf32> to vector<64x64xf32>
    %cst_157 = arith.constant dense<0.000000e+00> : vector<8x64xf32>
    %114 = tpu.matmul %107, %113, %cst_157 {dimension_numbers = #tpu.dot_dimension_numbers<[1], [0], [0], [1], [0, 0, 1, 1], [], []>} : vector<8x64xf32>, vector<64x64xf32>, vector<8x64xf32> -> vector<8x64xf32>
    %115 = arith.addf %105, %114 : vector<8x64xf32>
    %c0_158 = arith.constant 0 : index
    %c0_159 = arith.constant 0 : index
    %c1_160 = arith.constant 1 : index
    %c0_161 = arith.constant 0 : index
    %116 = vector.load %arg1[%c0_158, %c0_159, %c1_160, %c0_161] : memref<1x2x9x72xf32, #tpu.memory_space<vmem>>, vector<1x1x8x64xf32>
    %117 = vector.shape_cast %116 : vector<1x1x8x64xf32> to vector<8x64xf32>
    %c0_162 = arith.constant 0 : index
    %c3_163 = arith.constant 3 : index
    %c0_164 = arith.constant 0 : index
    %c0_165 = arith.constant 0 : index
    %118 = vector.load %arg2[%c0_162, %c3_163, %c0_164, %c0_165] : memref<2x9x64x64xf32, #tpu.memory_space<vmem>>, vector<1x1x64x64xf32>
    %119 = vector.shape_cast %118 : vector<1x1x64x64xf32> to vector<64x64xf32>
    %cst_166 = arith.constant dense<0.000000e+00> : vector<8x64xf32>
    %120 = tpu.matmul %117, %119, %cst_166 {dimension_numbers = #tpu.dot_dimension_numbers<[1], [0], [0], [1], [0, 0, 1, 1], [], []>} : vector<8x64xf32>, vector<64x64xf32>, vector<8x64xf32> -> vector<8x64xf32>
    %121 = arith.addf %111, %120 : vector<8x64xf32>
    %c1_167 = arith.constant 1 : index
    %c3_168 = arith.constant 3 : index
    %c0_169 = arith.constant 0 : index
    %c0_170 = arith.constant 0 : index
    %122 = vector.load %arg2[%c1_167, %c3_168, %c0_169, %c0_170] : memref<2x9x64x64xf32, #tpu.memory_space<vmem>>, vector<1x1x64x64xf32>
    %123 = vector.shape_cast %122 : vector<1x1x64x64xf32> to vector<64x64xf32>
    %cst_171 = arith.constant dense<0.000000e+00> : vector<8x64xf32>
    %124 = tpu.matmul %117, %123, %cst_171 {dimension_numbers = #tpu.dot_dimension_numbers<[1], [0], [0], [1], [0, 0, 1, 1], [], []>} : vector<8x64xf32>, vector<64x64xf32>, vector<8x64xf32> -> vector<8x64xf32>
    %125 = arith.addf %115, %124 : vector<8x64xf32>
    %c0_172 = arith.constant 0 : index
    %c0_173 = arith.constant 0 : index
    %c1_174 = arith.constant 1 : index
    %c4_175 = arith.constant 4 : index
    %126 = vector.load %arg1[%c0_172, %c0_173, %c1_174, %c4_175] : memref<1x2x9x72xf32, #tpu.memory_space<vmem>>, vector<1x1x8x64xf32>
    %127 = vector.shape_cast %126 : vector<1x1x8x64xf32> to vector<8x64xf32>
    %c0_176 = arith.constant 0 : index
    %c4_177 = arith.constant 4 : index
    %c0_178 = arith.constant 0 : index
    %c0_179 = arith.constant 0 : index
    %128 = vector.load %arg2[%c0_176, %c4_177, %c0_178, %c0_179] : memref<2x9x64x64xf32, #tpu.memory_space<vmem>>, vector<1x1x64x64xf32>
    %129 = vector.shape_cast %128 : vector<1x1x64x64xf32> to vector<64x64xf32>
    %cst_180 = arith.constant dense<0.000000e+00> : vector<8x64xf32>
    %130 = tpu.matmul %127, %129, %cst_180 {dimension_numbers = #tpu.dot_dimension_numbers<[1], [0], [0], [1], [0, 0, 1, 1], [], []>} : vector<8x64xf32>, vector<64x64xf32>, vector<8x64xf32> -> vector<8x64xf32>
    %131 = arith.addf %121, %130 : vector<8x64xf32>
    %c1_181 = arith.constant 1 : index
    %c4_182 = arith.constant 4 : index
    %c0_183 = arith.constant 0 : index
    %c0_184 = arith.constant 0 : index
    %132 = vector.load %arg2[%c1_181, %c4_182, %c0_183, %c0_184] : memref<2x9x64x64xf32, #tpu.memory_space<vmem>>, vector<1x1x64x64xf32>
    %133 = vector.shape_cast %132 : vector<1x1x64x64xf32> to vector<64x64xf32>
    %cst_185 = arith.constant dense<0.000000e+00> : vector<8x64xf32>
    %134 = tpu.matmul %127, %133, %cst_185 {dimension_numbers = #tpu.dot_dimension_numbers<[1], [0], [0], [1], [0, 0, 1, 1], [], []>} : vector<8x64xf32>, vector<64x64xf32>, vector<8x64xf32> -> vector<8x64xf32>
    %135 = arith.addf %125, %134 : vector<8x64xf32>
    %c0_186 = arith.constant 0 : index
    %c0_187 = arith.constant 0 : index
    %c1_188 = arith.constant 1 : index
    %c8_189 = arith.constant 8 : index
    %136 = vector.load %arg1[%c0_186, %c0_187, %c1_188, %c8_189] : memref<1x2x9x72xf32, #tpu.memory_space<vmem>>, vector<1x1x8x64xf32>
    %137 = vector.shape_cast %136 : vector<1x1x8x64xf32> to vector<8x64xf32>
    %c0_190 = arith.constant 0 : index
    %c5_191 = arith.constant 5 : index
    %c0_192 = arith.constant 0 : index
    %c0_193 = arith.constant 0 : index
    %138 = vector.load %arg2[%c0_190, %c5_191, %c0_192, %c0_193] : memref<2x9x64x64xf32, #tpu.memory_space<vmem>>, vector<1x1x64x64xf32>
    %139 = vector.shape_cast %138 : vector<1x1x64x64xf32> to vector<64x64xf32>
    %cst_194 = arith.constant dense<0.000000e+00> : vector<8x64xf32>
    %140 = tpu.matmul %137, %139, %cst_194 {dimension_numbers = #tpu.dot_dimension_numbers<[1], [0], [0], [1], [0, 0, 1, 1], [], []>} : vector<8x64xf32>, vector<64x64xf32>, vector<8x64xf32> -> vector<8x64xf32>
    %141 = arith.addf %131, %140 : vector<8x64xf32>
    %c1_195 = arith.constant 1 : index
    %c5_196 = arith.constant 5 : index
    %c0_197 = arith.constant 0 : index
    %c0_198 = arith.constant 0 : index
    %142 = vector.load %arg2[%c1_195, %c5_196, %c0_197, %c0_198] : memref<2x9x64x64xf32, #tpu.memory_space<vmem>>, vector<1x1x64x64xf32>
    %143 = vector.shape_cast %142 : vector<1x1x64x64xf32> to vector<64x64xf32>
    %cst_199 = arith.constant dense<0.000000e+00> : vector<8x64xf32>
    %144 = tpu.matmul %137, %143, %cst_199 {dimension_numbers = #tpu.dot_dimension_numbers<[1], [0], [0], [1], [0, 0, 1, 1], [], []>} : vector<8x64xf32>, vector<64x64xf32>, vector<8x64xf32> -> vector<8x64xf32>
    %145 = arith.addf %135, %144 : vector<8x64xf32>
    %c0_200 = arith.constant 0 : index
    %c1_201 = arith.constant 1 : index
    %c1_202 = arith.constant 1 : index
    %c0_203 = arith.constant 0 : index
    %146 = vector.load %arg1[%c0_200, %c1_201, %c1_202, %c0_203] : memref<1x2x9x72xf32, #tpu.memory_space<vmem>>, vector<1x1x8x64xf32>
    %147 = vector.shape_cast %146 : vector<1x1x8x64xf32> to vector<8x64xf32>
    %c0_204 = arith.constant 0 : index
    %c6_205 = arith.constant 6 : index
    %c0_206 = arith.constant 0 : index
    %c0_207 = arith.constant 0 : index
    %148 = vector.load %arg2[%c0_204, %c6_205, %c0_206, %c0_207] : memref<2x9x64x64xf32, #tpu.memory_space<vmem>>, vector<1x1x64x64xf32>
    %149 = vector.shape_cast %148 : vector<1x1x64x64xf32> to vector<64x64xf32>
    %cst_208 = arith.constant dense<0.000000e+00> : vector<8x64xf32>
    %150 = tpu.matmul %147, %149, %cst_208 {dimension_numbers = #tpu.dot_dimension_numbers<[1], [0], [0], [1], [0, 0, 1, 1], [], []>} : vector<8x64xf32>, vector<64x64xf32>, vector<8x64xf32> -> vector<8x64xf32>
    %151 = arith.addf %141, %150 : vector<8x64xf32>
    %c1_209 = arith.constant 1 : index
    %c6_210 = arith.constant 6 : index
    %c0_211 = arith.constant 0 : index
    %c0_212 = arith.constant 0 : index
    %152 = vector.load %arg2[%c1_209, %c6_210, %c0_211, %c0_212] : memref<2x9x64x64xf32, #tpu.memory_space<vmem>>, vector<1x1x64x64xf32>
    %153 = vector.shape_cast %152 : vector<1x1x64x64xf32> to vector<64x64xf32>
    %cst_213 = arith.constant dense<0.000000e+00> : vector<8x64xf32>
    %154 = tpu.matmul %147, %153, %cst_213 {dimension_numbers = #tpu.dot_dimension_numbers<[1], [0], [0], [1], [0, 0, 1, 1], [], []>} : vector<8x64xf32>, vector<64x64xf32>, vector<8x64xf32> -> vector<8x64xf32>
    %155 = arith.addf %145, %154 : vector<8x64xf32>
    %c0_214 = arith.constant 0 : index
    %c1_215 = arith.constant 1 : index
    %c1_216 = arith.constant 1 : index
    %c4_217 = arith.constant 4 : index
    %156 = vector.load %arg1[%c0_214, %c1_215, %c1_216, %c4_217] : memref<1x2x9x72xf32, #tpu.memory_space<vmem>>, vector<1x1x8x64xf32>
    %157 = vector.shape_cast %156 : vector<1x1x8x64xf32> to vector<8x64xf32>
    %c0_218 = arith.constant 0 : index
    %c7_219 = arith.constant 7 : index
    %c0_220 = arith.constant 0 : index
    %c0_221 = arith.constant 0 : index
    %158 = vector.load %arg2[%c0_218, %c7_219, %c0_220, %c0_221] : memref<2x9x64x64xf32, #tpu.memory_space<vmem>>, vector<1x1x64x64xf32>
    %159 = vector.shape_cast %158 : vector<1x1x64x64xf32> to vector<64x64xf32>
    %cst_222 = arith.constant dense<0.000000e+00> : vector<8x64xf32>
    %160 = tpu.matmul %157, %159, %cst_222 {dimension_numbers = #tpu.dot_dimension_numbers<[1], [0], [0], [1], [0, 0, 1, 1], [], []>} : vector<8x64xf32>, vector<64x64xf32>, vector<8x64xf32> -> vector<8x64xf32>
    %161 = arith.addf %151, %160 : vector<8x64xf32>
    %c1_223 = arith.constant 1 : index
    %c7_224 = arith.constant 7 : index
    %c0_225 = arith.constant 0 : index
    %c0_226 = arith.constant 0 : index
    %162 = vector.load %arg2[%c1_223, %c7_224, %c0_225, %c0_226] : memref<2x9x64x64xf32, #tpu.memory_space<vmem>>, vector<1x1x64x64xf32>
    %163 = vector.shape_cast %162 : vector<1x1x64x64xf32> to vector<64x64xf32>
    %cst_227 = arith.constant dense<0.000000e+00> : vector<8x64xf32>
    %164 = tpu.matmul %157, %163, %cst_227 {dimension_numbers = #tpu.dot_dimension_numbers<[1], [0], [0], [1], [0, 0, 1, 1], [], []>} : vector<8x64xf32>, vector<64x64xf32>, vector<8x64xf32> -> vector<8x64xf32>
    %165 = arith.addf %155, %164 : vector<8x64xf32>
    %c0_228 = arith.constant 0 : index
    %c1_229 = arith.constant 1 : index
    %c1_230 = arith.constant 1 : index
    %c8_231 = arith.constant 8 : index
    %166 = vector.load %arg1[%c0_228, %c1_229, %c1_230, %c8_231] : memref<1x2x9x72xf32, #tpu.memory_space<vmem>>, vector<1x1x8x64xf32>
    %167 = vector.shape_cast %166 : vector<1x1x8x64xf32> to vector<8x64xf32>
    %c0_232 = arith.constant 0 : index
    %c8_233 = arith.constant 8 : index
    %c0_234 = arith.constant 0 : index
    %c0_235 = arith.constant 0 : index
    %168 = vector.load %arg2[%c0_232, %c8_233, %c0_234, %c0_235] : memref<2x9x64x64xf32, #tpu.memory_space<vmem>>, vector<1x1x64x64xf32>
    %169 = vector.shape_cast %168 : vector<1x1x64x64xf32> to vector<64x64xf32>
    %cst_236 = arith.constant dense<0.000000e+00> : vector<8x64xf32>
    %170 = tpu.matmul %167, %169, %cst_236 {dimension_numbers = #tpu.dot_dimension_numbers<[1], [0], [0], [1], [0, 0, 1, 1], [], []>} : vector<8x64xf32>, vector<64x64xf32>, vector<8x64xf32> -> vector<8x64xf32>
    %171 = arith.addf %161, %170 : vector<8x64xf32>
    %c1_237 = arith.constant 1 : index
    %c8_238 = arith.constant 8 : index
    %c0_239 = arith.constant 0 : index
    %c0_240 = arith.constant 0 : index
    %172 = vector.load %arg2[%c1_237, %c8_238, %c0_239, %c0_240] : memref<2x9x64x64xf32, #tpu.memory_space<vmem>>, vector<1x1x64x64xf32>
    %173 = vector.shape_cast %172 : vector<1x1x64x64xf32> to vector<64x64xf32>
    %cst_241 = arith.constant dense<0.000000e+00> : vector<8x64xf32>
    %174 = tpu.matmul %167, %173, %cst_241 {dimension_numbers = #tpu.dot_dimension_numbers<[1], [0], [0], [1], [0, 0, 1, 1], [], []>} : vector<8x64xf32>, vector<64x64xf32>, vector<8x64xf32> -> vector<8x64xf32>
    %175 = arith.addf %165, %174 : vector<8x64xf32>
    %176 = arith.maximumf %83, %87 : vector<8x64xf32>
    %177 = arith.maximumf %171, %175 : vector<8x64xf32>
    %178 = arith.maximumf %176, %177 : vector<8x64xf32>
    %c0_242 = arith.constant 0 : index
    %c0_243 = arith.constant 0 : index
    %179 = vector.load %arg3[%c0_242, %c0_243] : memref<1x64xf32, #tpu.memory_space<vmem>>, vector<1x64xf32>
    %180 = vector.broadcast %179 : vector<1x64xf32> to vector<8x64xf32>
    %181 = arith.addf %178, %180 : vector<8x64xf32>
    %cst_244 = arith.constant 0.000000e+00 : f32
    %182 = vector.broadcast %cst_244 : f32 to vector<8x64xf32>
    %183 = arith.maximumf %181, %182 : vector<8x64xf32>
    %c0_245 = arith.constant 0 : index
    %c0_246 = arith.constant 0 : index
    %184 = vector.load %arg5[%c0_245, %c0_246] : memref<1x32xf32, #tpu.memory_space<vmem>>, vector<1x32xf32>
    %185 = vector.extract_strided_slice %183 {offsets = [0, 0], sizes = [1, 64], strides = [1, 1]} : vector<8x64xf32> to vector<1x64xf32>
    %c0_247 = arith.constant 0 : index
    %c0_248 = arith.constant 0 : index
    %c0_249 = arith.constant 0 : index
    %186 = vector.load %arg4[%c0_247, %c0_248, %c0_249] : memref<8x64x32xf32, #tpu.memory_space<vmem>>, vector<1x64x32xf32>
    %187 = vector.shape_cast %186 : vector<1x64x32xf32> to vector<64x32xf32>
    %cst_250 = arith.constant dense<0.000000e+00> : vector<1x32xf32>
    %188 = tpu.matmul %185, %187, %cst_250 {dimension_numbers = #tpu.dot_dimension_numbers<[1], [0], [0], [1], [0, 0, 1, 1], [], []>} : vector<1x64xf32>, vector<64x32xf32>, vector<1x32xf32> -> vector<1x32xf32>
    %189 = arith.addf %184, %188 : vector<1x32xf32>
    %190 = vector.extract_strided_slice %183 {offsets = [1, 0], sizes = [1, 64], strides = [1, 1]} : vector<8x64xf32> to vector<1x64xf32>
    %c1_251 = arith.constant 1 : index
    %c0_252 = arith.constant 0 : index
    %c0_253 = arith.constant 0 : index
    %191 = vector.load %arg4[%c1_251, %c0_252, %c0_253] : memref<8x64x32xf32, #tpu.memory_space<vmem>>, vector<1x64x32xf32>
    %192 = vector.shape_cast %191 : vector<1x64x32xf32> to vector<64x32xf32>
    %cst_254 = arith.constant dense<0.000000e+00> : vector<1x32xf32>
    %193 = tpu.matmul %190, %192, %cst_254 {dimension_numbers = #tpu.dot_dimension_numbers<[1], [0], [0], [1], [0, 0, 1, 1], [], []>} : vector<1x64xf32>, vector<64x32xf32>, vector<1x32xf32> -> vector<1x32xf32>
    %194 = arith.addf %189, %193 : vector<1x32xf32>
    %195 = vector.extract_strided_slice %183 {offsets = [2, 0], sizes = [1, 64], strides = [1, 1]} : vector<8x64xf32> to vector<1x64xf32>
    %c2_255 = arith.constant 2 : index
    %c0_256 = arith.constant 0 : index
    %c0_257 = arith.constant 0 : index
    %196 = vector.load %arg4[%c2_255, %c0_256, %c0_257] : memref<8x64x32xf32, #tpu.memory_space<vmem>>, vector<1x64x32xf32>
    %197 = vector.shape_cast %196 : vector<1x64x32xf32> to vector<64x32xf32>
    %cst_258 = arith.constant dense<0.000000e+00> : vector<1x32xf32>
    %198 = tpu.matmul %195, %197, %cst_258 {dimension_numbers = #tpu.dot_dimension_numbers<[1], [0], [0], [1], [0, 0, 1, 1], [], []>} : vector<1x64xf32>, vector<64x32xf32>, vector<1x32xf32> -> vector<1x32xf32>
    %199 = arith.addf %194, %198 : vector<1x32xf32>
    %200 = vector.extract_strided_slice %183 {offsets = [3, 0], sizes = [1, 64], strides = [1, 1]} : vector<8x64xf32> to vector<1x64xf32>
    %c3_259 = arith.constant 3 : index
    %c0_260 = arith.constant 0 : index
    %c0_261 = arith.constant 0 : index
    %201 = vector.load %arg4[%c3_259, %c0_260, %c0_261] : memref<8x64x32xf32, #tpu.memory_space<vmem>>, vector<1x64x32xf32>
    %202 = vector.shape_cast %201 : vector<1x64x32xf32> to vector<64x32xf32>
    %cst_262 = arith.constant dense<0.000000e+00> : vector<1x32xf32>
    %203 = tpu.matmul %200, %202, %cst_262 {dimension_numbers = #tpu.dot_dimension_numbers<[1], [0], [0], [1], [0, 0, 1, 1], [], []>} : vector<1x64xf32>, vector<64x32xf32>, vector<1x32xf32> -> vector<1x32xf32>
    %204 = arith.addf %199, %203 : vector<1x32xf32>
    %205 = vector.extract_strided_slice %183 {offsets = [4, 0], sizes = [1, 64], strides = [1, 1]} : vector<8x64xf32> to vector<1x64xf32>
    %c4_263 = arith.constant 4 : index
    %c0_264 = arith.constant 0 : index
    %c0_265 = arith.constant 0 : index
    %206 = vector.load %arg4[%c4_263, %c0_264, %c0_265] : memref<8x64x32xf32, #tpu.memory_space<vmem>>, vector<1x64x32xf32>
    %207 = vector.shape_cast %206 : vector<1x64x32xf32> to vector<64x32xf32>
    %cst_266 = arith.constant dense<0.000000e+00> : vector<1x32xf32>
    %208 = tpu.matmul %205, %207, %cst_266 {dimension_numbers = #tpu.dot_dimension_numbers<[1], [0], [0], [1], [0, 0, 1, 1], [], []>} : vector<1x64xf32>, vector<64x32xf32>, vector<1x32xf32> -> vector<1x32xf32>
    %209 = arith.addf %204, %208 : vector<1x32xf32>
    %210 = vector.extract_strided_slice %183 {offsets = [5, 0], sizes = [1, 64], strides = [1, 1]} : vector<8x64xf32> to vector<1x64xf32>
    %c5_267 = arith.constant 5 : index
    %c0_268 = arith.constant 0 : index
    %c0_269 = arith.constant 0 : index
    %211 = vector.load %arg4[%c5_267, %c0_268, %c0_269] : memref<8x64x32xf32, #tpu.memory_space<vmem>>, vector<1x64x32xf32>
    %212 = vector.shape_cast %211 : vector<1x64x32xf32> to vector<64x32xf32>
    %cst_270 = arith.constant dense<0.000000e+00> : vector<1x32xf32>
    %213 = tpu.matmul %210, %212, %cst_270 {dimension_numbers = #tpu.dot_dimension_numbers<[1], [0], [0], [1], [0, 0, 1, 1], [], []>} : vector<1x64xf32>, vector<64x32xf32>, vector<1x32xf32> -> vector<1x32xf32>
    %214 = arith.addf %209, %213 : vector<1x32xf32>
    %215 = vector.extract_strided_slice %183 {offsets = [6, 0], sizes = [1, 64], strides = [1, 1]} : vector<8x64xf32> to vector<1x64xf32>
    %c6_271 = arith.constant 6 : index
    %c0_272 = arith.constant 0 : index
    %c0_273 = arith.constant 0 : index
    %216 = vector.load %arg4[%c6_271, %c0_272, %c0_273] : memref<8x64x32xf32, #tpu.memory_space<vmem>>, vector<1x64x32xf32>
    %217 = vector.shape_cast %216 : vector<1x64x32xf32> to vector<64x32xf32>
    %cst_274 = arith.constant dense<0.000000e+00> : vector<1x32xf32>
    %218 = tpu.matmul %215, %217, %cst_274 {dimension_numbers = #tpu.dot_dimension_numbers<[1], [0], [0], [1], [0, 0, 1, 1], [], []>} : vector<1x64xf32>, vector<64x32xf32>, vector<1x32xf32> -> vector<1x32xf32>
    %219 = arith.addf %214, %218 : vector<1x32xf32>
    %220 = vector.extract_strided_slice %183 {offsets = [7, 0], sizes = [1, 64], strides = [1, 1]} : vector<8x64xf32> to vector<1x64xf32>
    %c7_275 = arith.constant 7 : index
    %c0_276 = arith.constant 0 : index
    %c0_277 = arith.constant 0 : index
    %221 = vector.load %arg4[%c7_275, %c0_276, %c0_277] : memref<8x64x32xf32, #tpu.memory_space<vmem>>, vector<1x64x32xf32>
    %222 = vector.shape_cast %221 : vector<1x64x32xf32> to vector<64x32xf32>
    %cst_278 = arith.constant dense<0.000000e+00> : vector<1x32xf32>
    %223 = tpu.matmul %220, %222, %cst_278 {dimension_numbers = #tpu.dot_dimension_numbers<[1], [0], [0], [1], [0, 0, 1, 1], [], []>} : vector<1x64xf32>, vector<64x32xf32>, vector<1x32xf32> -> vector<1x32xf32>
    %224 = arith.addf %219, %223 : vector<1x32xf32>
    %cst_279 = arith.constant 0.000000e+00 : f32
    %225 = vector.broadcast %cst_279 : f32 to vector<1x32xf32>
    %226 = arith.maximumf %224, %225 : vector<1x32xf32>
    %c0_280 = arith.constant 0 : index
    %c0_281 = arith.constant 0 : index
    %227 = vector.load %arg6[%c0_280, %c0_281] : memref<32x10xf32, #tpu.memory_space<vmem>>, vector<32x10xf32>
    %cst_282 = arith.constant dense<0.000000e+00> : vector<1x10xf32>
    %228 = tpu.matmul %226, %227, %cst_282 {dimension_numbers = #tpu.dot_dimension_numbers<[1], [0], [0], [1], [0, 0, 1, 1], [], []>} : vector<1x32xf32>, vector<32x10xf32>, vector<1x10xf32> -> vector<1x10xf32>
    %c0_283 = arith.constant 0 : index
    %c0_284 = arith.constant 0 : index
    %229 = vector.load %arg7[%c0_283, %c0_284] : memref<1x10xf32, #tpu.memory_space<vmem>>, vector<1x10xf32>
    %230 = arith.addf %228, %229 : vector<1x10xf32>
    %c0_285 = arith.constant 0 : index
    %c0_286 = arith.constant 0 : index
    %c0_287 = arith.constant 0 : index
    %231 = vector.load %arg8[%c0_285, %c0_286, %c0_287] : memref<1x1x10xf32, #tpu.memory_space<vmem>>, vector<1x1x10xf32>
    %232 = vector.shape_cast %231 : vector<1x1x10xf32> to vector<1x10xf32>
    %233 = vector.shape_cast %230 : vector<1x10xf32> to vector<1x1x10xf32>
    tpu.vector_store %arg8[%c0_285, %c0_286, %c0_287], %233 {strides = array<i32>} : memref<1x1x10xf32, #tpu.memory_space<vmem>>, vector<1x1x10xf32>,
    return
  }
  func.func @transform_0(%arg0: i32) -> (i32, i32, i32, i32) {
    %c0_i32 = arith.constant 0 : i32
    %c0_i32_0 = arith.constant 0 : i32
    %c0_i32_1 = arith.constant 0 : i32
    %c0_i32_2 = arith.constant 0 : i32
    return %arg0, %c0_i32, %c0_i32_0, %c0_i32_1 : i32, i32, i32, i32
  }
  func.func @transform_1(%arg0: i32) -> (i32, i32, i32, i32) {
    %c0_i32 = arith.constant 0 : i32
    %c0_i32_0 = arith.constant 0 : i32
    %c0_i32_1 = arith.constant 0 : i32
    %c0_i32_2 = arith.constant 0 : i32
    %c0_i32_3 = arith.constant 0 : i32
    return %c0_i32, %c0_i32_0, %c0_i32_1, %c0_i32_2 : i32, i32, i32, i32
  }
  func.func @transform_2(%arg0: i32) -> (i32, i32) {
    %c0_i32 = arith.constant 0 : i32
    %c0_i32_0 = arith.constant 0 : i32
    %c0_i32_1 = arith.constant 0 : i32
    return %c0_i32, %c0_i32_0 : i32, i32
  }
  func.func @transform_3(%arg0: i32) -> (i32, i32, i32) {
    %c0_i32 = arith.constant 0 : i32
    %c0_i32_0 = arith.constant 0 : i32
    %c0_i32_1 = arith.constant 0 : i32
    %c0_i32_2 = arith.constant 0 : i32
    return %c0_i32, %c0_i32_0, %c0_i32_1 : i32, i32, i32
  }
  func.func @transform_4(%arg0: i32) -> (i32, i32) {
    %c0_i32 = arith.constant 0 : i32
    %c0_i32_0 = arith.constant 0 : i32
    %c0_i32_1 = arith.constant 0 : i32
    return %c0_i32, %c0_i32_0 : i32, i32
  }
  func.func @transform_5(%arg0: i32) -> (i32, i32) {
    %c0_i32 = arith.constant 0 : i32
    %c0_i32_0 = arith.constant 0 : i32
    %c0_i32_1 = arith.constant 0 : i32
    return %c0_i32, %c0_i32_0 : i32, i32
  }
  func.func @transform_6(%arg0: i32) -> (i32, i32) {
    %c0_i32 = arith.constant 0 : i32
    %c0_i32_0 = arith.constant 0 : i32
    %c0_i32_1 = arith.constant 0 : i32
    return %c0_i32, %c0_i32_0 : i32, i32
  }
  func.func @transform_7(%arg0: i32) -> (i32, i32, i32) {
    %c0_i32 = arith.constant 0 : i32
    %c0_i32_0 = arith.constant 0 : i32
    %c0_i32_1 = arith.constant 0 : i32
    return %arg0, %c0_i32, %c0_i32_0 : i32, i32, i32
  }
}

</mosaic_0001>

<bundles_post_ra>
// kernel: _lambda_.1
= control target key start
LH: loop header
LB: loop body
LE: loop exit
PB: predicated region body
PF: predicated region fallthrough
CT: control target
= control target key end

     0   :  { %12 = vsyncpa [#allocation3], 0  ;;  %s7559_s0 = inlined_call_operand.vmem [shape: f32[2,2,9,72], index: 0, kind: input, shape index: {}]   ;;  %s7560_s1 = inlined_call_operand.vmem [shape: f32[2,9,64,64], index: 1, kind: input, shape index: {}]   ;;  %s7561_s2 = inlined_call_operand.vmem [shape: f32[1,64], index: 2, kind: input, shape index: {}]   ;;  %s7562_s3 = inlined_call_operand.vmem [shape: f32[8,64,32], index: 3, kind: input, shape index: {}]   ;;  %s7563_s4 = inlined_call_operand.vmem [shape: f32[1,32], index: 4, kind: input, shape index: {}]   ;;  %s7564_s5 = inlined_call_operand.vmem [shape: f32[32,10], index: 5, kind: input, shape index: {}]   ;;  %s7565_s6 = inlined_call_operand.vmem [shape: f32[1,10], index: 6, kind: input, shape index: {}]   ;;  %s7566_s7 = inlined_call_operand.hbm [shape: f32[2,1,10], index: 7, kind: output, shape index: {}]  }
   0x1   :  { %14 = vsyncpa [#allocation3 + $0x1], 0  ;;  %s6126_s24 = smov 0   ;;  %s6128_s25 = smov 0  }
   0x2   :  { %s6130_s26 = smov 0   ;;  %s6132_s27 = smov 0  }
   0x3 LB: > { %s6147_s28 = sadd.s32 4294967295, %s6078_s27   ;;  %s3861_s29 = sadd.s32 4294967294, %s6078_s27   ;;  %s6078_s27 = sphi %s6132_s27, %s7572_s27   ;;  %s6074_s26 = sphi %s6130_s26, %s7571_s26   ;;  %s6070_s25 = sphi %s6128_s25, %s7570_s25   ;;  %s6066_s24 = sphi %s6126_s24, %s7569_s24  }
   0x4   : > { %s6151_s30 = sadd.s32 1, %s6078_s27   ;;  %s179_s8 = sadd.s32 1, %s6074_s26 }
   0x5   : > { %s176_s9 = ssub.s32 %s6078_s27, %s6151_s30  ;;  %p189_p0 = scmp.ne.s32.totalorder %s6074_s26, %s6070_s25 }
   0x6   : > { %p177_p1 = scmp.eq.s32.totalorder %s176_s9, 0  ;;  %p190_p2 = scmp.eq.s32.totalorder %s6147_s28, 1 }
   0x7   : > { %p195_p3 = scmp.ne.s32.totalorder %s6070_s25, %s6066_s24  ;;  %p196_p4 = scmp.eq.s32.totalorder %s3861_s29, 1 }
   0x8   : > { %s6162_s10 = scalar_select %p177_p1, %s6074_s26, %s179_s8  }
   0x9   : > { %p6164_p5 = por %p190_p2, %p189_p0  ;;  %p6168_p6 = por %p196_p4, %p195_p3 }
   0xa   : > { %p3864_p7 = scmp.ge.s32.totalorder %s6078_s27, 1  ;;  %p240_p8 = scmp.lt.s32.totalorder %s6078_s27, 3 }
   0xc   : > { %p241_p9 = pnand %p3864_p7, %p240_p8 }
   0xd   : > { %p271_p10 = scmp.lt.s32.totalorder (!%p241_p9), %s6147_s28, 1  ;;  %v3875_v0 = vld [vmem:[%s7560_s1 + $0x40] sm:$0xff] (!%p241_p9)  ;;  %v3876_v1 = vld [vmem:[%s7560_s1 + $0x48] sm:$0xff] (!%p241_p9)  ;;  %v6080_v3 = vmov (!%p241_p9), 0.0|0.0   ;;  %v3877_v6 = vld [vmem:[%s7560_s1 + $0x50] sm:$0xff] (!%p241_p9)  ;;  %vm6081_vm0 = vmmov (!%p241_p9), 0  }
   0xe   : > { %244 = sbr.rel (%p241_p9) target bundleno = 1253 (0x4e5), region = 48  ;;  %v3932_v2 = vld [vmem:[%s7560_s1 + $0x100] sm:$0xff] (!%p241_p9)  ;;  %5359 = vmatprep.subr.bf16.mxu1 (!%p241_p9), %v6080_v3  ;;  %5455 = vmatprep.subr.bf16.mxu0 (!%p241_p9), %v6080_v3  ;;  %v6186_v4 = vpack.c.bf16 (!%p241_p9), %v3876_v1, %v3875_v0  ;;  %v3933_v5 = vld [vmem:[%s7560_s1 + $0x108] sm:$0xff] (!%p241_p9)  ;;  %v3878_v7 = vld [vmem:[%s7560_s1 + $0x58] sm:$0xff] (!%p241_p9)  ;;  %v6082_v11 = vmov (!%p241_p9), 0.0   ;;  %s6083_s14 = smov (!%p241_p9), 124  }
   0xf   : > { %v6198_v8 = vpack.c.bf16 (!%p241_p9), %v3933_v5, %v3932_v2  ;;  %v3934_v9 = vld [vmem:[%s7560_s1 + $0x110] sm:$0xff] (!%p241_p9)  ;;  %v3935_v10 = vld [vmem:[%s7560_s1 + $0x118] sm:$0xff] (!%p241_p9)  ;;  %4528 = vmatprep.mubr.msk.f32.mxu1 (!%p241_p9), %vm6081_vm0, %v6082_v11  ;;  %4680 = vmatprep.mubr.msk.f32.mxu0 (!%p241_p9), %vm6081_vm0, %v6082_v11  ;;  %v6213_v12 = vpack.c.bf16 (!%p241_p9), %v3878_v7, %v3877_v6  ;;  %v3879_v14 = vld [vmem:[%s7560_s1 + $0x60] sm:$0xff] (!%p241_p9)  ;;  %s6084_s29 = smov (!%p241_p9), 120   ;;  %vm306_vm1 = vcmask (!%p241_p9), 523264   ;;  %vm3717_vm2 = vcmask (!%p241_p9), 261120  }
  0x10   : > { %5361 = vmatpush3.bf16.msra.mxu1 (!%p241_p9), %v6186_v4  ;;  %v6215_v13 = vpack.c.bf16 (!%p241_p9), %v3935_v10, %v3934_v9  ;;  %v3880_v15 = vld [vmem:[%s7560_s1 + $0x68] sm:$0xff] (!%p241_p9)  ;;  %v3936_v16 = vld [vmem:[%s7560_s1 + $0x120] sm:$0xff] (!%p241_p9)  ;;  %v3881_v22 = vld [vmem:[%s7560_s1 + $0x70] sm:$0xff] (!%p241_p9)  ;;  %s269_s20 = sand.u32 (!%p241_p9), 1, %s6070_s25   ;;  %vm3791_vm3 = vcmask (!%p241_p9), 73728  }
  0x11   : > { %5457 = vmatpush3.bf16.msra.mxu0 (!%p241_p9), %v6198_v8  ;;  %5362 = vmatprep.subr.bf16.mxu1 (!%p241_p9), %v6080_v3  ;;  %v3937_v17 = vld [vmem:[%s7560_s1 + $0x128] sm:$0xff] (!%p241_p9)  ;;  %v6247_v20 = vpack.c.bf16 (!%p241_p9), %v3880_v15, %v3879_v14  ;;  %v3882_v23 = vld [vmem:[%s7560_s1 + $0x78] sm:$0xff] (!%p241_p9)  ;;  %v3938_v24 = vld [vmem:[%s7560_s1 + $0x130] sm:$0xff] (!%p241_p9) }
  0x12   : > { %5458 = vmatprep.subr.bf16.mxu0 (!%p241_p9), %v6080_v3  ;;  %v6249_v21 = vpack.c.bf16 (!%p241_p9), %v3937_v17, %v3936_v16  ;;  %v3939_v25 = vld [vmem:[%s7560_s1 + $0x138] sm:$0xff] (!%p241_p9)  ;;  %v6272_v27 = vpack.c.bf16 (!%p241_p9), %v3882_v23, %v3881_v22  ;;  %v277_v30 = vld [vmem:[%s7560_s1] sm:$0xff] (!%p241_p9)  ;;  %v278_v31 = vld [vmem:[%s7560_s1 + $0x8] sm:$0xff] (!%p241_p9) }
  0x13   : > { %v6274_v28 = vpack.c.bf16 (!%p241_p9), %v3939_v25, %v3938_v24  ;;  %v3950_v32 = vld [vmem:[%s7560_s1 + $0x140] sm:$0xff] (!%p241_p9)  ;;  %v3951_v33 = vld [vmem:[%s7560_s1 + $0x148] sm:$0xff] (!%p241_p9)  ;;  %v6303_v34 = vpack.c.bf16 (!%p241_p9), %v278_v31, %v277_v30  ;;  %v279_v36 = vld [vmem:[%s7560_s1 + $0x10] sm:$0xff] (!%p241_p9) }
  0x14   : > { %5364 = vmatpush3.bf16.msra.mxu1 (!%p241_p9), %v6213_v12  ;;  %v6305_v35 = vpack.c.bf16 (!%p241_p9), %v3951_v33, %v3950_v32  ;;  %v280_v37 = vld [vmem:[%s7560_s1 + $0x18] sm:$0xff] (!%p241_p9)  ;;  %v3952_v38 = vld [vmem:[%s7560_s1 + $0x150] sm:$0xff] (!%p241_p9)  ;;  %v281_v44 = vld [vmem:[%s7560_s1 + $0x20] sm:$0xff] (!%p241_p9) }
  0x15   : > { %s272_s8 = scalar_select %p271_p10, %s6147_s28, 1  ;;  %5460 = vmatpush3.bf16.msra.mxu0 %v6215_v13  ;;  %5365 = vmatprep.subr.bf16.mxu1 %v6080_v3  ;;  %v3953_v39 = vld [vmem:[%s7560_s1 + $0x158] sm:$0xff]  ;;  %v6329_v42 = vpack.c.bf16 %v280_v37, %v279_v36  ;;  %v282_v45 = vld [vmem:[%s7560_s1 + $0x28] sm:$0xff]  ;;  %v3954_v46 = vld [vmem:[%s7560_s1 + $0x160] sm:$0xff] }
  0x16   : > { %5461 = vmatprep.subr.bf16.mxu0 %v6080_v3  ;;  %v6331_v43 = vpack.c.bf16 %v3953_v39, %v3952_v38  ;;  %v3955_v47 = vld [vmem:[%s7560_s1 + $0x168] sm:$0xff]  ;;  %v6353_v48 = vpack.c.bf16 %v282_v45, %v281_v44  ;;  %v283_v50 = vld [vmem:[%s7560_s1 + $0x30] sm:$0xff]  ;;  %v284_v51 = vld [vmem:[%s7560_s1 + $0x38] sm:$0xff] }
  0x17   : > { %s4110_s16 = sshll.u32 %s272_s8, 5  ;;  %v6355_v49 = vpack.c.bf16 %v3955_v47, %v3954_v46  ;;  %v3956_v52 = vld [vmem:[%s7560_s1 + $0x170] sm:$0xff]  ;;  %v3957_v53 = vld [vmem:[%s7560_s1 + $0x178] sm:$0xff]  ;;  %v6373_v54 = vpack.c.bf16 %v284_v51, %v283_v50  ;;  %v3885_v56 = vld [vmem:[%s7560_s1 + $0x280] sm:$0xff]  ;;  %s270_s8 = scalar_lea.vmem [#allocation2], %s269_s20 }
  0x18   : > { %s6223_s21 = scalar_lea.vmem %s7559_s0, %s4110_s16  ;;  %5367 = vmatpush3.bf16.msra.mxu1 %v6247_v20  ;;  %v6375_v55 = vpack.c.bf16 %v3957_v53, %v3956_v52  ;;  %v3886_v57 = vld [vmem:[%s7560_s1 + $0x288] sm:$0xff]  ;;  %v3968_v58 = vld [vmem:[%s7560_s1 + $0x180] sm:$0xff]  ;;  %v3887_v63 = vld [vmem:[%s7560_s1 + $0x290] sm:$0xff]  ;;  %s3806_s9 = sshll.u32 %s270_s8, 4  ;;  %s7519_s9 = int_to_ptr.vmem [resolvable:$true] %s3806_s9 }
  0x19   : > { %v6236_v18 = vld [vmem:[%s6223_s21 + $0x10] sm:$0xff]  ;;  %v6239_v19 = vld [vmem:[%s6223_s21] sm:$0xff]  ;;  %5463 = vmatpush3.bf16.msra.mxu0 %v6249_v21  ;;  %5368 = vmatprep.subr.bf16.mxu1 %v6080_v3  ;;  %v3969_v59 = vld [vmem:[%s7560_s1 + $0x188] sm:$0xff]  ;;  %v6395_v61 = vpack.c.bf16 %v3886_v57, %v3885_v56  ;;  %s3794_s16 = scalar_lea.sflag [#allocation3], %s269_s20  ;;  %s6016_s17 = scalar_lea.vmem %s7519_s9, 16 }
  0x1a   : > { %938 = vrot.lane.b32.xlu1 %v6236_v18, %s6083_s14  ;;  %304 = vrot.lane.b32.xlu0 %v6239_v19, %s6083_s14  ;;  %v6268_v26 = vld [vmem:[%s6223_s21 + $0x1] sm:$0xff]  ;;  %v6286_v29 = vld [vmem:[%s6223_s21 + $0x11] sm:$0xff]  ;;  %v6397_v62 = vpack.c.bf16 %v3969_v59, %v3968_v58  ;;  %p6017_p11 = scmp.ne.s32.totalorder %s7519_s9, %s6016_s17 }
  0x1b   : > { %5464 = vmatprep.subr.bf16.mxu0 %v6080_v3  ;;  %v3888_v0 = vld [vmem:[%s7560_s1 + $0x298] sm:$0xff]  ;;  %v3970_v1 = vld [vmem:[%s7560_s1 + $0x190] sm:$0xff]  ;;  %v3889_v7 = vld [vmem:[%s7560_s1 + $0x2a0] sm:$0xff] }
  0x1c   : > { %5370 = vmatpush3.bf16.msra.mxu1 %v6272_v27  ;;  %v3971_v2 = vld [vmem:[%s7560_s1 + $0x198] sm:$0xff]  ;;  %v6419_v5 = vpack.c.bf16 %v3888_v0, %v3887_v63  ;;  %v3890_v9 = vld [vmem:[%s7560_s1 + $0x2a8] sm:$0xff]  ;;  %v3972_v10 = vld [vmem:[%s7560_s1 + $0x1a0] sm:$0xff]  ;;  %p6018_p12 = pnand %p6017_p11, %p6164_p5 }
  0x1d   : > { %5466 = vmatpush3.bf16.msra.mxu0 %v6274_v28  ;;  %5371 = vmatprep.subr.bf16.mxu1 %v6080_v3  ;;  %v6421_v6 = vpack.c.bf16 %v3971_v2, %v3970_v1  ;;  %v3973_v14 = vld [vmem:[%s7560_s1 + $0x1a8] sm:$0xff]  ;;  %v6443_v15 = vpack.c.bf16 %v3890_v9, %v3889_v7  ;;  %v3891_v17 = vld [vmem:[%s7560_s1 + $0x2b0] sm:$0xff]  ;;  %v3892_v22 = vld [vmem:[%s7560_s1 + $0x2b8] sm:$0xff] }
  0x1e   : > { %1102 = vrot.lane.b32.xlu1 %v6236_v18, %s6084_s29  ;;  %609 = vrot.lane.b32.xlu0 %v6239_v19, %s6084_s29  ;;  %v6445_v16 = vpack.c.bf16 %v3973_v14, %v3972_v10  ;;  %v3974_v23 = vld [vmem:[%s7560_s1 + $0x1b0] sm:$0xff]  ;;  %v3975_v24 = vld [vmem:[%s7560_s1 + $0x1b8] sm:$0xff]  ;;  %v6463_v25 = vpack.c.bf16 %v3892_v22, %v3891_v17  ;;  %p6019_p13 = pneg %p6018_p12 }
  0x1f   : > { %5479 = vmatprep.subr.bf16.mxu0 %v6080_v3  ;;  %v6465_v30 = vpack.c.bf16 %v3975_v24, %v3974_v23  ;;  %v3867_v31 = vld [vmem:[%s7560_s1 + $0x240] sm:$0xff]  ;;  %v3868_v32 = vld [vmem:[%s7560_s1 + $0x248] sm:$0xff]  ;;  %v3869_v39 = vld [vmem:[%s7560_s1 + $0x250] sm:$0xff] }
  0x20   : > { %v3986_v33 = vld [vmem:[%s7560_s1 + $0x1c0] sm:$0xff]  ;;  %v3987_v36 = vld [vmem:[%s7560_s1 + $0x1c8] sm:$0xff]  ;;  %v6483_v37 = vpack.c.bf16 %v3868_v32, %v3867_v31  ;;  %v3870_v44 = vld [vmem:[%s7560_s1 + $0x258] sm:$0xff] }
  0x21   : > { %v6485_v38 = vpack.c.bf16 %v3987_v36, %v3986_v33  ;;  %v3988_v45 = vld [vmem:[%s7560_s1 + $0x1d0] sm:$0xff]  ;;  %v3989_v46 = vld [vmem:[%s7560_s1 + $0x1d8] sm:$0xff]  ;;  %v6507_v47 = vpack.c.bf16 %v3870_v44, %v3869_v39  ;;  %v3871_v51 = vld [vmem:[%s7560_s1 + $0x260] sm:$0xff] }
  0x22   : > { %1430 = vrot.lane.b32.xlu0 %v6268_v26, %s6083_s14  ;;  %1594 = vrot.lane.b32.xlu1 %v6268_v26, %s6084_s29  ;;  %v6509_v50 = vpack.c.bf16 %v3989_v46, %v3988_v45  ;;  %v3990_v52 = vld [vmem:[%s7560_s1 + $0x1e0] sm:$0xff]  ;;  %v3991_v53 = vld [vmem:[%s7560_s1 + $0x1e8] sm:$0xff] }
  0x23   : > { %v6533_v57 = vpack.c.bf16 %v3991_v53, %v3990_v52  ;;  %v3873_v58 = vld [vmem:[%s7560_s1 + $0x270] sm:$0xff]  ;;  %v3874_v59 = vld [vmem:[%s7560_s1 + $0x278] sm:$0xff]  ;;  %v3895_v9 = vld [vmem:[%s7560_s1 + $0x80] sm:$0xff] }
  0x24   : > { %v3992_v63 = vld [vmem:[%s7560_s1 + $0x1f0] sm:$0xff]  ;;  %v3993_v0 = vld [vmem:[%s7560_s1 + $0x1f8] sm:$0xff]  ;;  %v6553_v2 = vpack.c.bf16 %v3874_v59, %v3873_v58  ;;  %v3896_v10 = vld [vmem:[%s7560_s1 + $0x88] sm:$0xff] }
  0x25   : > { %v6555_v7 = vpack.c.bf16 %v3993_v0, %v3992_v63  ;;  %v4004_v14 = vld [vmem:[%s7560_s1 + $0x200] sm:$0xff]  ;;  %v4005_v17 = vld [vmem:[%s7560_s1 + $0x208] sm:$0xff]  ;;  %v6575_v23 = vpack.c.bf16 %v3896_v10, %v3895_v9  ;;  %v3897_v31 = vld [vmem:[%s7560_s1 + $0x90] sm:$0xff] }
  0x26   : > { %2743 = vrot.lane.b32.xlu0 %v6286_v29, %s6083_s14  ;;  %2889 = vrot.lane.b32.xlu1 %v6286_v29, %s6084_s29  ;;  %v6577_v24 = vpack.c.bf16 %v4005_v17, %v4004_v14  ;;  %v3898_v32 = vld [vmem:[%s7560_s1 + $0x98] sm:$0xff]  ;;  %v4006_v33 = vld [vmem:[%s7560_s1 + $0x210] sm:$0xff]  ;;  %s4107_s29 = sshll.u32 %s6147_s28, 4  ;;  %s6085_s28 = smov [#allocation2]  }
  0x27   : > { %v4007_v36 = vld [vmem:[%s7560_s1 + $0x218] sm:$0xff]  ;;  %v6599_v39 = vpack.c.bf16 %v3898_v32, %v3897_v31  ;;  %v3899_v45 = vld [vmem:[%s7560_s1 + $0xa0] sm:$0xff]  ;;  %v3901_v53 = vld [vmem:[%s7560_s1 + $0xb0] sm:$0xff]  ;;  %s6020_s18 = sshll.u32 %s6085_s28, 4  ;;  %s6021_s18 = int_to_ptr.vmem [resolvable:$false] %s6020_s18 }
  0x28   : > { %v6601_v44 = vpack.c.bf16 %v4007_v36, %v4006_v33  ;;  %v4008_v46 = vld [vmem:[%s7560_s1 + $0x220] sm:$0xff]  ;;  %v3902_v58 = vld [vmem:[%s7560_s1 + $0xb8] sm:$0xff]  ;;  %v4010_v59 = vld [vmem:[%s7560_s1 + $0x230] sm:$0xff]  ;;  %s6022_s19 = scalar_lea.vmem %s6021_s18, 32  ;;  %p6023_p0 = scmp.lt.s32.totalorder %s7519_s9, %s6021_s18 }
  0x29   : > { %v4011_v63 = vld [vmem:[%s7560_s1 + $0x238] sm:$0xff]  ;;  %v6643_v0 = vpack.c.bf16 %v3902_v58, %v3901_v53  ;;  %v3904_v10 = vld [vmem:[%s7560_s1 + $0x2c0] sm:$0xff]  ;;  %v3905_v14 = vld [vmem:[%s7560_s1 + $0x2c8] sm:$0xff]  ;;  %p6024_p1 = scmp.lt.s32.totalorder %s6022_s19, %s6016_s17 }
  0x2a   : > { %v6645_v9 = vpack.c.bf16 %v4011_v63, %v4010_v59  ;;  %v6659_v31 = vpack.c.bf16 %v3905_v14, %v3904_v10  ;;  %v3906_v32 = vld [vmem:[%s7560_s1 + $0x2d0] sm:$0xff]  ;;  %v3907_v33 = vld [vmem:[%s7560_s1 + $0x2d8] sm:$0xff]  ;;  %v3915_v58 = vld [vmem:[%s7560_s1 + $0xc8] sm:$0xff] }
  0x2b   : > { %v6675_v36 = vpack.c.bf16 %v3907_v33, %v3906_v32  ;;  %v3917_v63 = vld [vmem:[%s7560_s1 + $0xd8] sm:$0xff]  ;;  %v3918_v10 = vld [vmem:[%s7560_s1 + $0xe0] sm:$0xff]  ;;  %v3920_v14 = vld [vmem:[%s7560_s1 + $0xf0] sm:$0xff]  ;;  %p6025_p2 = por %p6024_p1, %p6023_p0 }
  0x2c   : > { %v3921_v32 = vld [vmem:[%s7560_s1 + $0xf8] sm:$0xff] }
  0x2d   : > { %v6759_v33 = vpack.c.bf16 %v3921_v32, %v3920_v14  ;;  %v3944_v14 = vld [vmem:[%s7560_s1 + $0x358] sm:$0xff]  ;;  %v3945_v32 = vld [vmem:[%s7560_s1 + $0x360] sm:$0xff]  ;;  %p6026_p3 = pnand %p6025_p2, %p6019_p13 }
  0x8c   : > { %v6319_v40 = vpop.permute.xlu1 %938  ;;  %v6321_v41 = vpop.permute.xlu0 %304 }
  0x8d   : > { %4529 = vmatmul.mubr.msk.f32.vlgmr.msra.gmra.mrb[0].mxu1 %vm306_vm1, %v6321_v41  ;;  %4681 = vmatmul.mubr.msk.f32.vlgmr.msra.gmra.mrb[0].mxu0 %vm306_vm1, %v6319_v40 }
  0x8e   : > { %5373 = vmatpush3.bf16.msra.mxu1 %v6303_v34  ;;  %5481 = vmatpush3.bf16.msra.mxu0 %v6305_v35 }
  0x8f   : > { %5374 = vmatprep.subr.bf16.mxu1 %v6080_v3  ;;  %5482 = vmatprep.subr.bf16.mxu0 %v6080_v3 }
  0x90   : > { %4718 = vmatprep.mubr.msk.f32.mxu0 %vm6081_vm0, %v6082_v11  ;;  %4547 = vmatprep.mubr.msk.f32.mxu1 %vm6081_vm0, %v6082_v11  ;;  %v6393_v60 = vpop.permute.xlu1 %1102  ;;  %v6549_v1 = vpop.permute.xlu0 %609 }
  0x92   : > { %5376 = vmatpush3.bf16.msra.mxu1 %v6329_v42  ;;  %5484 = vmatpush3.bf16.msra.mxu0 %v6331_v43 }
  0x93   : > { %5377 = vmatprep.subr.bf16.mxu1 %v6080_v3  ;;  %5485 = vmatprep.subr.bf16.mxu0 %v6080_v3 }
  0x94   : > { %v6573_v22 = vpop.permute.xlu0 %1430  ;;  %v6657_v17 = vpop.permute.xlu1 %1594 }
  0x96   : > { %5379 = vmatpush3.bf16.msra.mxu1 %v6353_v48  ;;  %5487 = vmatpush3.bf16.msra.mxu0 %v6355_v49 }
  0x97   : > { %5380 = vmatprep.subr.bf16.mxu1 %v6080_v3  ;;  %5488 = vmatprep.subr.bf16.mxu0 %v6080_v3 }
  0x9a   : > { %5382 = vmatpush3.bf16.msra.mxu1 %v6373_v54  ;;  %5490 = vmatpush3.bf16.msra.mxu0 %v6375_v55 }
  0x9b   : > { %5503 = vmatprep.subr.bf16.mxu0 %v6080_v3  ;;  %5383 = vmatprep.subr.bf16.mxu1 %v6080_v3 }
  0x9d   : > { %4548 = vmatmul.mubr.msk.f32.vlgmr.msra.gmra.mrb[0].mxu1 %vm306_vm1, %v6239_v19  ;;  %4719 = vmatmul.mubr.msk.f32.vlgmr.msra.gmra.mrb[0].mxu0 %vm306_vm1, %v6393_v60 }
  0x9e   : > { %5385 = vmatpush3.bf16.msra.mxu1 %v6395_v61  ;;  %5505 = vmatpush3.bf16.msra.mxu0 %v6397_v62 }
  0x9f   : > { %5386 = vmatprep.subr.bf16.mxu1 %v6080_v3  ;;  %5506 = vmatprep.subr.bf16.mxu0 %v6080_v3 }
  0xa0   : > { %4566 = vmatprep.mubr.msk.f32.mxu1 %vm6081_vm0, %v6082_v11  ;;  %4756 = vmatprep.mubr.msk.f32.mxu0 %vm6081_vm0, %v6082_v11 }
  0xa2   : > { %5388 = vmatpush3.bf16.msra.mxu1 %v6419_v5  ;;  %5508 = vmatpush3.bf16.msra.mxu0 %v6421_v6 }
  0xa3   : > { %5389 = vmatprep.subr.bf16.mxu1 %v6080_v3  ;;  %5509 = vmatprep.subr.bf16.mxu0 %v6080_v3 }
  0xa6   : > { %5391 = vmatpush3.bf16.msra.mxu1 %v6443_v15  ;;  %5511 = vmatpush3.bf16.msra.mxu0 %v6445_v16 }
  0xa7   : > { %5392 = vmatprep.subr.bf16.mxu1 %v6080_v3  ;;  %5512 = vmatprep.subr.bf16.mxu0 %v6080_v3 }
  0xaa   : > { %5394 = vmatpush3.bf16.msra.mxu1 %v6463_v25  ;;  %5514 = vmatpush3.bf16.msra.mxu0 %v6465_v30 }
  0xab   : > { %5395 = vmatprep.subr.bf16.mxu1 %v6080_v3  ;;  %5527 = vmatprep.subr.bf16.mxu0 %v6080_v3 }
  0xad   : > { %4567 = vmatmul.mubr.msk.f32.vlgmr.msra.gmra.mrb[2].mxu1 %vm306_vm1, %v6321_v41  ;;  %4757 = vmatmul.mubr.msk.f32.vlgmr.msra.gmra.mrb[0].mxu0 %vm306_vm1, %v6268_v26  ;;  %v3872_v41 = vld [vmem:[%s7560_s1 + $0x268] sm:$0xff] }
  0xae   : > { %5397 = vmatpush3.bf16.msra.mxu1 %v6483_v37  ;;  %5529 = vmatpush3.bf16.msra.mxu0 %v6485_v38  ;;  %v6531_v56 = vpack.c.bf16 %v3872_v41, %v3871_v51  ;;  %v4009_v51 = vld [vmem:[%s7560_s1 + $0x228] sm:$0xff] }
  0xaf   : > { %5398 = vmatprep.subr.bf16.mxu1 %v6080_v3  ;;  %5530 = vmatprep.subr.bf16.mxu0 %v6080_v3  ;;  %v6625_v52 = vpack.c.bf16 %v4009_v51, %v4008_v46  ;;  %v3910_v46 = vld [vmem:[%s7560_s1 + $0x2f0] sm:$0xff]  ;;  %v3911_v51 = vld [vmem:[%s7560_s1 + $0x2f8] sm:$0xff] }
  0xb0   : > { %4585 = vmatprep.mubr.msk.f32.mxu1 %vm6081_vm0, %v6082_v11  ;;  %4794 = vmatprep.mubr.msk.f32.mxu0 %vm6081_vm0, %v6082_v11  ;;  %v6703_v53 = vpack.c.bf16 %v3911_v51, %v3910_v46  ;;  %v3926_v46 = vld [vmem:[%s7560_s1 + $0x318] sm:$0xff]  ;;  %v3927_v51 = vld [vmem:[%s7560_s1 + $0x320] sm:$0xff] }
  0xb2   : > { %5400 = vmatpush3.bf16.msra.mxu1 %v6507_v47  ;;  %5532 = vmatpush3.bf16.msra.mxu0 %v6509_v50 }
  0xb3   : > { %5401 = vmatprep.subr.bf16.mxu1 %v6080_v3  ;;  %5533 = vmatprep.subr.bf16.mxu0 %v6080_v3 }
  0xb6   : > { %5403 = vmatpush3.bf16.msra.mxu1 %v6531_v56  ;;  %5535 = vmatpush3.bf16.msra.mxu0 %v6533_v57 }
  0xb7   : > { %5404 = vmatprep.subr.bf16.mxu1 %v6080_v3  ;;  %5536 = vmatprep.subr.bf16.mxu0 %v6080_v3 }
  0xba   : > { %5406 = vmatpush3.bf16.msra.mxu1 %v6553_v2  ;;  %5538 = vmatpush3.bf16.msra.mxu0 %v6555_v7 }
  0xbb   : > { %5407 = vmatprep.subr.bf16.mxu1 %v6080_v3  ;;  %5551 = vmatprep.subr.bf16.mxu0 %v6080_v3 }
  0xbd   : > { %4586 = vmatmul.mubr.msk.f32.vlgmr.msra.gmra.mrb[2].mxu1 %vm306_vm1, %v6239_v19  ;;  %4795 = vmatmul.mubr.msk.f32.vlgmr.msra.gmra.mrb[0].mxu0 %vm306_vm1, %v6573_v22  ;;  %v3900_v19 = vld [vmem:[%s7560_s1 + $0xa8] sm:$0xff] }
  0xbe   : > { %5409 = vmatpush3.bf16.msra.mxu1 %v6575_v23  ;;  %5553 = vmatpush3.bf16.msra.mxu0 %v6577_v24  ;;  %v6623_v41 = vpack.c.bf16 %v3900_v19, %v3899_v45  ;;  %v3908_v45 = vld [vmem:[%s7560_s1 + $0x2e0] sm:$0xff]  ;;  %v3909_v19 = vld [vmem:[%s7560_s1 + $0x2e8] sm:$0xff] }
  0xbf   : > { %5410 = vmatprep.subr.bf16.mxu1 %v6080_v3  ;;  %5554 = vmatprep.subr.bf16.mxu0 %v6080_v3 }
  0xc0   : > { %4604 = vmatprep.mubr.msk.f32.mxu1 %vm6081_vm0, %v6082_v11  ;;  %4832 = vmatprep.mubr.msk.f32.mxu0 %vm6081_vm0, %v6082_v11 }
  0xc2   : > { %5412 = vmatpush3.bf16.msra.mxu1 %v6599_v39  ;;  %5556 = vmatpush3.bf16.msra.mxu0 %v6601_v44 }
  0xc3   : > { %5413 = vmatprep.subr.bf16.mxu1 %v6080_v3  ;;  %5557 = vmatprep.subr.bf16.mxu0 %v6080_v3 }
  0xc6   : > { %5415 = vmatpush3.bf16.msra.mxu1 %v6623_v41  ;;  %5559 = vmatpush3.bf16.msra.mxu0 %v6625_v52 }
  0xc7   : > { %5416 = vmatprep.subr.bf16.mxu1 %v6080_v3  ;;  %5560 = vmatprep.subr.bf16.mxu0 %v6080_v3 }
  0xca   : > { %5418 = vmatpush3.bf16.msra.mxu1 %v6643_v0  ;;  %5562 = vmatpush3.bf16.msra.mxu0 %v6645_v9 }
  0xcb   : > { %5419 = vmatprep.subr.bf16.mxu1 %v6080_v3  ;;  %5575 = vmatprep.subr.bf16.mxu0 %v6080_v3 }
  0xcd   : > { %4605 = vmatmul.mubr.msk.f32.vlgmr.msra.gmra.mrb[0].mxu1 %vm306_vm1, %v6549_v1  ;;  %4833 = vmatmul.mubr.msk.f32.vlgmr.msra.gmra.mrb[0].mxu0 %vm306_vm1, %v6657_v17 }
  0xce   : > { %5421 = vmatpush3.bf16.msra.mxu1 %v6659_v31  ;;  %5577 = vmatpush3.bf16.msra.mxu0 %v6186_v4  ;;  %v6691_v4 = vpack.c.bf16 %v3909_v19, %v3908_v45  ;;  %v3924_v45 = vld [vmem:[%s7560_s1 + $0x308] sm:$0xff] }
  0xcf   : > { %5422 = vmatprep.subr.bf16.mxu1 %v6080_v3  ;;  %5578 = vmatprep.subr.bf16.mxu0 %v6080_v3 }
  0xd0   : > { %4623 = vmatprep.mubr.msk.f32.mxu1 %vm6081_vm0, %v6082_v11  ;;  %4870 = vmatprep.mubr.msk.f32.mxu0 %vm6081_vm0, %v6082_v11 }
  0xd2   : > { %5424 = vmatpush3.bf16.msra.mxu1 %v6675_v36  ;;  %5580 = vmatpush3.bf16.msra.mxu0 %v6213_v12  ;;  %v3914_v12 = vld [vmem:[%s7560_s1 + $0xc0] sm:$0xff] }
  0xd3   : > { %5425 = vmatprep.subr.bf16.mxu1 %v6080_v3  ;;  %5581 = vmatprep.subr.bf16.mxu0 %v6080_v3  ;;  %v6715_v59 = vpack.c.bf16 %v3915_v58, %v3914_v12  ;;  %v3928_v12 = vld [vmem:[%s7560_s1 + $0x328] sm:$0xff]  ;;  %v3929_v58 = vld [vmem:[%s7560_s1 + $0x330] sm:$0xff] }
  0xd6   : > { %5427 = vmatpush3.bf16.msra.mxu1 %v6691_v4  ;;  %5583 = vmatpush3.bf16.msra.mxu0 %v6247_v20  ;;  %v3916_v20 = vld [vmem:[%s7560_s1 + $0xd0] sm:$0xff] }
  0xd7   : > { %5428 = vmatprep.subr.bf16.mxu1 %v6080_v3  ;;  %5584 = vmatprep.subr.bf16.mxu0 %v6080_v3 }
  0xda   : > { %5430 = vmatpush3.bf16.msra.mxu1 %v6703_v53  ;;  %5586 = vmatpush3.bf16.msra.mxu0 %v6272_v27  ;;  %v6731_v27 = vpack.c.bf16 %v3917_v63, %v3916_v20  ;;  %v3930_v20 = vld [vmem:[%s7560_s1 + $0x338] sm:$0xff] }
  0xdb   : > { %5431 = vmatprep.subr.bf16.mxu1 %v6080_v3  ;;  %5587 = vmatprep.subr.bf16.mxu0 %v6080_v3  ;;  %v6815_v63 = vpack.c.bf16 %v3930_v20, %v3929_v58  ;;  %v3962_v58 = vld [vmem:[%s7560_s1 + $0x398] sm:$0xff]  ;;  %v3963_v20 = vld [vmem:[%s7560_s1 + $0x3a0] sm:$0xff] }
  0xdd   : > { %4624 = vmatmul.mubr.msk.f32.vlgmr.msra.gmra.mrb[2].mxu1 %vm306_vm1, %v6549_v1  ;;  %4871 = vmatmul.mubr.msk.f32.vlgmr.msra.gmra.mrb[2].mxu0 %vm306_vm1, %v6319_v40  ;;  %v3919_v1 = vld [vmem:[%s7560_s1 + $0xe8] sm:$0xff] }
  0xde   : > { %5433 = vmatpush3.bf16.msra.mxu1 %v6715_v59  ;;  %5589 = vmatpush3.bf16.msra.mxu0 %v6303_v34  ;;  %v6747_v34 = vpack.c.bf16 %v3919_v1, %v3918_v10  ;;  %v3942_v10 = vld [vmem:[%s7560_s1 + $0x348] sm:$0xff] }
  0xdf   : > { %5434 = vmatprep.subr.bf16.mxu1 %v6080_v3  ;;  %5590 = vmatprep.subr.bf16.mxu0 %v6080_v3 }
  0xe0   : > { %4642 = vmatprep.mubr.msk.f32.mxu1 %vm6081_vm0, %v6082_v11  ;;  %4889 = vmatprep.mubr.msk.f32.mxu0 %vm6081_vm0, %v6082_v11 }
  0xe2   : > { %5436 = vmatpush3.bf16.msra.mxu1 %v6731_v27  ;;  %5592 = vmatpush3.bf16.msra.mxu0 %v6329_v42  ;;  %v3923_v42 = vld [vmem:[%s7560_s1 + $0x300] sm:$0xff] }
  0xe3   : > { %5437 = vmatprep.subr.bf16.mxu1 %v6080_v3  ;;  %5593 = vmatprep.subr.bf16.mxu0 %v6080_v3  ;;  %v6771_v19 = vpack.c.bf16 %v3924_v45, %v3923_v42  ;;  %v3946_v42 = vld [vmem:[%s7560_s1 + $0x368] sm:$0xff]  ;;  %v3947_v45 = vld [vmem:[%s7560_s1 + $0x370] sm:$0xff] }
  0xe6   : > { %5439 = vmatpush3.bf16.msra.mxu1 %v6747_v34  ;;  %5595 = vmatpush3.bf16.msra.mxu0 %v6353_v48  ;;  %v3925_v48 = vld [vmem:[%s7560_s1 + $0x310] sm:$0xff] }
  0xe7   : > { %5440 = vmatprep.subr.bf16.mxu1 %v6080_v3  ;;  %5596 = vmatprep.subr.bf16.mxu0 %v6080_v3 }
  0xea   : > { %5442 = vmatpush3.bf16.msra.mxu1 %v6759_v33  ;;  %5598 = vmatpush3.bf16.msra.mxu0 %v6373_v54  ;;  %v6787_v54 = vpack.c.bf16 %v3926_v46, %v3925_v48  ;;  %v3948_v48 = vld [vmem:[%s7560_s1 + $0x378] sm:$0xff] }
  0xeb   : > { %5443 = vmatprep.subr.bf16.mxu1 %v6080_v3  ;;  %5623 = vmatprep.subr.bf16.mxu0 %v6080_v3  ;;  %v6871_v46 = vpack.c.bf16 %v3948_v48, %v3947_v45  ;;  %v3980_v45 = vld [vmem:[%s7560_s1 + $0x3d8] sm:$0xff]  ;;  %v3981_v48 = vld [vmem:[%s7560_s1 + $0x3e0] sm:$0xff] }
  0xed   : > { %4643 = vmatmul.mubr.msk.f32.vlgmr.msra.gmra.mrb[0].mxu1 %vm306_vm1, %v6236_v18  ;;  %4890 = vmatmul.mubr.msk.f32.vlgmr.msra.gmra.mrb[2].mxu0 %vm306_vm1, %v6236_v18 }
  0xee   : > { %5445 = vmatpush3.bf16.msra.mxu1 %v6771_v19  ;;  %5625 = vmatpush3.bf16.msra.mxu0 %v6575_v23  ;;  %v6803_v23 = vpack.c.bf16 %v3928_v12, %v3927_v51  ;;  %v3960_v51 = vld [vmem:[%s7560_s1 + $0x388] sm:$0xff] }
  0xef   : > { %5446 = vmatprep.subr.bf16.mxu1 %v6080_v3  ;;  %5626 = vmatprep.subr.bf16.mxu0 %v6080_v3 }
  0xf0   : > { %4661 = vmatprep.mubr.msk.f32.mxu1 %vm6081_vm0, %v6082_v11  ;;  %4946 = vmatprep.mubr.msk.f32.mxu0 %vm6081_vm0, %v6082_v11 }
  0xf2   : > { %5448 = vmatpush3.bf16.msra.mxu1 %v6787_v54  ;;  %5628 = vmatpush3.bf16.msra.mxu0 %v6599_v39  ;;  %v3941_v39 = vld [vmem:[%s7560_s1 + $0x340] sm:$0xff] }
  0xf3   : > { %5449 = vmatprep.subr.bf16.mxu1 %v6080_v3  ;;  %5629 = vmatprep.subr.bf16.mxu0 %v6080_v3  ;;  %v6827_v1 = vpack.c.bf16 %v3942_v10, %v3941_v39  ;;  %v3964_v39 = vld [vmem:[%s7560_s1 + $0x3a8] sm:$0xff]  ;;  %v3965_v10 = vld [vmem:[%s7560_s1 + $0x3b0] sm:$0xff] }
  0xf6   : > { %5451 = vmatpush3.bf16.msra.mxu1 %v6803_v23  ;;  %5631 = vmatpush3.bf16.msra.mxu0 %v6623_v41  ;;  %v3943_v41 = vld [vmem:[%s7560_s1 + $0x350] sm:$0xff] }
  0xf7   : > { %5452 = vmatprep.subr.bf16.mxu1 %v6080_v3  ;;  %5632 = vmatprep.subr.bf16.mxu0 %v6080_v3 }
  0xfa   : > { %5454 = vmatpush3.bf16.msra.mxu1 %v6815_v63  ;;  %5634 = vmatpush3.bf16.msra.mxu0 %v6643_v0  ;;  %v6843_v0 = vpack.c.bf16 %v3944_v14, %v3943_v41  ;;  %v3966_v41 = vld [vmem:[%s7560_s1 + $0x3b8] sm:$0xff] }
  0xfb   : > { %5467 = vmatprep.subr.bf16.mxu1 %v6080_v3  ;;  %5647 = vmatprep.subr.bf16.mxu0 %v6080_v3  ;;  %v6927_v14 = vpack.c.bf16 %v3966_v41, %v3965_v10  ;;  %v3998_v10 = vld [vmem:[%s7560_s1 + $0x418] sm:$0xff]  ;;  %v3999_v41 = vld [vmem:[%s7560_s1 + $0x420] sm:$0xff] }
  0xfd   : > { %4662 = vmatmul.mubr.msk.f32.vlgmr.msra.gmra.mrb[2].mxu1 %vm306_vm1, %v6236_v18  ;;  %4947 = vmatmul.mubr.msk.f32.vlgmr.msra.gmra.mrb[2].mxu0 %vm306_vm1, %v6393_v60 }
  0xfe   : > { %5469 = vmatpush3.bf16.msra.mxu1 %v6827_v1  ;;  %5649 = vmatpush3.bf16.msra.mxu0 %v6715_v59  ;;  %v6859_v59 = vpack.c.bf16 %v3946_v42, %v3945_v32  ;;  %v3978_v32 = vld [vmem:[%s7560_s1 + $0x3c8] sm:$0xff] }
  0xff   : > { %5470 = vmatprep.subr.bf16.mxu1 %v6080_v3  ;;  %5650 = vmatprep.subr.bf16.mxu0 %v6080_v3 }
 0x100   : > { %4699 = vmatprep.mubr.msk.f32.mxu1 %vm6081_vm0, %v6082_v11  ;;  %4984 = vmatprep.mubr.msk.f32.mxu0 %vm6081_vm0, %v6082_v11 }
 0x102   : > { %5472 = vmatpush3.bf16.msra.mxu1 %v6843_v0  ;;  %5652 = vmatpush3.bf16.msra.mxu0 %v6731_v27  ;;  %v3959_v27 = vld [vmem:[%s7560_s1 + $0x380] sm:$0xff] }
 0x103   : > { %5473 = vmatprep.subr.bf16.mxu1 %v6080_v3  ;;  %5653 = vmatprep.subr.bf16.mxu0 %v6080_v3  ;;  %v6883_v12 = vpack.c.bf16 %v3960_v51, %v3959_v27  ;;  %v3982_v27 = vld [vmem:[%s7560_s1 + $0x3e8] sm:$0xff]  ;;  %v3983_v51 = vld [vmem:[%s7560_s1 + $0x3f0] sm:$0xff] }
 0x106   : > { %5475 = vmatpush3.bf16.msra.mxu1 %v6859_v59  ;;  %5655 = vmatpush3.bf16.msra.mxu0 %v6747_v34  ;;  %v3961_v34 = vld [vmem:[%s7560_s1 + $0x390] sm:$0xff] }
 0x107   : > { %5476 = vmatprep.subr.bf16.mxu1 %v6080_v3  ;;  %5656 = vmatprep.subr.bf16.mxu0 %v6080_v3 }
 0x10a   : > { %5478 = vmatpush3.bf16.msra.mxu1 %v6871_v46  ;;  %5658 = vmatpush3.bf16.msra.mxu0 %v6759_v33  ;;  %v6899_v33 = vpack.c.bf16 %v3962_v58, %v3961_v34  ;;  %v3984_v34 = vld [vmem:[%s7560_s1 + $0x3f8] sm:$0xff] }
 0x10b   : > { %5491 = vmatprep.subr.bf16.mxu1 %v6080_v3  ;;  %5671 = vmatprep.subr.bf16.mxu0 %v6080_v3  ;;  %v6983_v58 = vpack.c.bf16 %v3984_v34, %v3983_v51  ;;  %v4016_v51 = vld [vmem:[%s7560_s1 + $0x458] sm:$0xff]  ;;  %v4017_v34 = vld [vmem:[%s7560_s1 + $0x460] sm:$0xff] }
 0x10d   : > { %4700 = vmatmul.mubr.msk.f32.vlgmr.msra.gmra.mrb[2].mxu1 %vm306_vm1, %v6319_v40  ;;  %4985 = vmatmul.mubr.msk.f32.vlgmr.msra.gmra.mrb[2].mxu0 %vm306_vm1, %v6268_v26 }
 0x10e   : > { %5493 = vmatpush3.bf16.msra.mxu1 %v6883_v12  ;;  %5673 = vmatpush3.bf16.msra.mxu0 %v6198_v8  ;;  %v6915_v8 = vpack.c.bf16 %v3964_v39, %v3963_v20  ;;  %v3996_v20 = vld [vmem:[%s7560_s1 + $0x408] sm:$0xff] }
 0x10f   : > { %5494 = vmatprep.subr.bf16.mxu1 %v6080_v3  ;;  %5674 = vmatprep.subr.bf16.mxu0 %v6080_v3 }
 0x110   : > { %4737 = vmatprep.mubr.msk.f32.mxu1 %vm6081_vm0, %v6082_v11  ;;  %5022 = vmatprep.mubr.msk.f32.mxu0 %vm6081_vm0, %v6082_v11 }
 0x112   : > { %5496 = vmatpush3.bf16.msra.mxu1 %v6899_v33  ;;  %5676 = vmatpush3.bf16.msra.mxu0 %v6215_v13  ;;  %v3977_v13 = vld [vmem:[%s7560_s1 + $0x3c0] sm:$0xff] }
 0x113   : > { %5497 = vmatprep.subr.bf16.mxu1 %v6080_v3  ;;  %5677 = vmatprep.subr.bf16.mxu0 %v6080_v3  ;;  %v6939_v42 = vpack.c.bf16 %v3978_v32, %v3977_v13  ;;  %v4000_v13 = vld [vmem:[%s7560_s1 + $0x428] sm:$0xff]  ;;  %v4001_v32 = vld [vmem:[%s7560_s1 + $0x430] sm:$0xff] }
 0x116   : > { %5499 = vmatpush3.bf16.msra.mxu1 %v6915_v8  ;;  %5679 = vmatpush3.bf16.msra.mxu0 %v6249_v21  ;;  %v3979_v21 = vld [vmem:[%s7560_s1 + $0x3d0] sm:$0xff] }
 0x117   : > { %5500 = vmatprep.subr.bf16.mxu1 %v6080_v3  ;;  %5680 = vmatprep.subr.bf16.mxu0 %v6080_v3 }
 0x11a   : > { %5502 = vmatpush3.bf16.msra.mxu1 %v6927_v14  ;;  %5682 = vmatpush3.bf16.msra.mxu0 %v6274_v28  ;;  %v6955_v28 = vpack.c.bf16 %v3980_v45, %v3979_v21  ;;  %v4002_v21 = vld [vmem:[%s7560_s1 + $0x438] sm:$0xff] }
 0x11b   : > { %5515 = vmatprep.subr.bf16.mxu1 %v6080_v3  ;;  %5695 = vmatprep.subr.bf16.mxu0 %v6080_v3  ;;  %v7039_v45 = vpack.c.bf16 %v4002_v21, %v4001_v32  ;;  %v4052_v32 = vld [vmem:[%s7562_s3 + $0x80] sm:$0xff]  ;;  %v4053_v21 = vld [vmem:[%s7562_s3 + $0x88] sm:$0xff] }
 0x11d   : > { %4738 = vmatmul.mubr.msk.f32.vlgmr.msra.gmra.mrb[2].mxu1 %vm306_vm1, %v6393_v60  ;;  %5023 = vmatmul.mubr.msk.f32.vlgmr.msra.gmra.mrb[2].mxu0 %vm306_vm1, %v6573_v22 }
 0x11e   : > { %5517 = vmatpush3.bf16.msra.mxu1 %v6939_v42  ;;  %5697 = vmatpush3.bf16.msra.mxu0 %v6305_v35  ;;  %v6971_v35 = vpack.c.bf16 %v3982_v27, %v3981_v48  ;;  %v4014_v48 = vld [vmem:[%s7560_s1 + $0x448] sm:$0xff] }
 0x11f   : > { %5518 = vmatprep.subr.bf16.mxu1 %v6080_v3  ;;  %5698 = vmatprep.subr.bf16.mxu0 %v6080_v3 }
 0x120   : > { %4775 = vmatprep.mubr.msk.f32.mxu1 %vm6081_vm0, %v6082_v11  ;;  %5060 = vmatprep.mubr.msk.f32.mxu0 %vm6081_vm0, %v6082_v11 }
 0x122   : > { %5520 = vmatpush3.bf16.msra.mxu1 %v6955_v28  ;;  %5700 = vmatpush3.bf16.msra.mxu0 %v6331_v43  ;;  %v3995_v43 = vld [vmem:[%s7560_s1 + $0x400] sm:$0xff] }
 0x123   : > { %5521 = vmatprep.subr.bf16.mxu1 %v6080_v3  ;;  %5701 = vmatprep.subr.bf16.mxu0 %v6080_v3  ;;  %v6995_v39 = vpack.c.bf16 %v3996_v20, %v3995_v43  ;;  %v4018_v43 = vld [vmem:[%s7560_s1 + $0x468] sm:$0xff]  ;;  %v4020_v20 = vld [vmem:[%s7560_s1 + $0x478] sm:$0xff] }
 0x126   : > { %5523 = vmatpush3.bf16.msra.mxu1 %v6971_v35  ;;  %5703 = vmatpush3.bf16.msra.mxu0 %v6355_v49  ;;  %v3997_v49 = vld [vmem:[%s7560_s1 + $0x410] sm:$0xff] }
 0x127   : > { %5524 = vmatprep.subr.bf16.mxu1 %v6080_v3  ;;  %5704 = vmatprep.subr.bf16.mxu0 %v6080_v3 }
 0x12a   : > { %5526 = vmatpush3.bf16.msra.mxu1 %v6983_v58  ;;  %5706 = vmatpush3.bf16.msra.mxu0 %v6375_v55  ;;  %v7011_v55 = vpack.c.bf16 %v3998_v10, %v3997_v49  ;;  %v4048_v10 = vld [vmem:[%s7562_s3 + $0x68] sm:$0xff] }
 0x12b   : > { %5539 = vmatprep.subr.bf16.mxu1 %v6080_v3  ;;  %5719 = vmatprep.subr.bf16.mxu0 %v6080_v3 }
 0x12d   : > { %4776 = vmatmul.mubr.msk.f32.vlgmr.msra.gmra.mrb[2].mxu1 %vm306_vm1, %v6268_v26  ;;  %5061 = vmatmul.mubr.msk.f32.vlgmr.msra.gmra.mrb[2].mxu0 %vm306_vm1, %v6657_v17 }
 0x12e   : > { %5541 = vmatpush3.bf16.msra.mxu1 %v6995_v39  ;;  %5721 = vmatpush3.bf16.msra.mxu0 %v6397_v62  ;;  %v7027_v62 = vpack.c.bf16 %v4000_v13, %v3999_v41  ;;  %v4049_v41 = vld [vmem:[%s7562_s3 + $0x70] sm:$0xff]  ;;  %v4050_v13 = vld [vmem:[%s7562_s3 + $0x78] sm:$0xff] }
 0x12f   : > { %5542 = vmatprep.subr.bf16.mxu1 %v6080_v3  ;;  %5722 = vmatprep.subr.bf16.mxu0 %v6080_v3 }
 0x130   : > { %4813 = vmatprep.mubr.msk.f32.mxu1 %vm6081_vm0, %v6082_v11  ;;  %5098 = vmatprep.mubr.msk.f32.mxu0 %vm6081_vm0, %v6082_v11 }
 0x132   : > { %5544 = vmatpush3.bf16.msra.mxu1 %v7011_v55  ;;  %5724 = vmatpush3.bf16.msra.mxu0 %v6421_v6  ;;  %v4013_v6 = vld [vmem:[%s7560_s1 + $0x440] sm:$0xff] }
 0x133   : > { %5545 = vmatprep.subr.bf16.mxu1 %v6080_v3  ;;  %5725 = vmatprep.subr.bf16.mxu0 %v6080_v3  ;;  %v7051_v27 = vpack.c.bf16 %v4014_v48, %v4013_v6  ;;  %v4054_v48 = vld [vmem:[%s7562_s3 + $0x90] sm:$0xff] }
 0x136   : > { %5547 = vmatpush3.bf16.msra.mxu1 %v7027_v62  ;;  %5727 = vmatpush3.bf16.msra.mxu0 %v6445_v16  ;;  %v4015_v16 = vld [vmem:[%s7560_s1 + $0x450] sm:$0xff] }
 0x137   : > { %5548 = vmatprep.subr.bf16.mxu1 %v6080_v3  ;;  %5728 = vmatprep.subr.bf16.mxu0 %v6080_v3 }
 0x13a   : > { %5550 = vmatpush3.bf16.msra.mxu1 %v7039_v45  ;;  %5730 = vmatpush3.bf16.msra.mxu0 %v6465_v30  ;;  %v7067_v30 = vpack.c.bf16 %v4016_v51, %v4015_v16  ;;  %v4056_v51 = vld [vmem:[%s7562_s3 + $0xa0] sm:$0xff] }
 0x13b   : > { %5563 = vmatprep.subr.bf16.mxu1 %v6080_v3  ;;  %5743 = vmatprep.subr.bf16.mxu0 %v6080_v3 }
 0x13d   : > { %4814 = vmatmul.mubr.msk.f32.vlgmr.msra.gmra.mrb[2].mxu1 %vm306_vm1, %v6573_v22  ;;  %5099 = vmatmul.mubr.msk.f32.vlgmr.msra.gmra.mrb[2].mxu0 %vm306_vm1, %v6286_v29  ;;  %v7083_v29 = vpack.c.bf16 %v4018_v43, %v4017_v34  ;;  %v4058_v43 = vld [vmem:[%s7562_s3 + $0xb0] sm:$0xff] }
 0x13e   : > { %5565 = vmatpush3.bf16.msra.mxu1 %v7051_v27  ;;  %5745 = vmatpush3.bf16.msra.mxu0 %v6485_v38  ;;  %v4019_v38 = vld [vmem:[%s7560_s1 + $0x470] sm:$0xff] }
 0x13f   : > { %5566 = vmatprep.subr.bf16.mxu1 %v6080_v3  ;;  %5746 = vmatprep.subr.bf16.mxu0 %v6080_v3  ;;  %v7095_v49 = vpack.c.bf16 %v4020_v20, %v4019_v38  ;;  %v4061_v20 = vld [vmem:[%s7562_s3 + $0xc0] sm:$0xff] }
 0x140   : > { %4851 = vmatprep.mubr.msk.f32.mxu1 %vm6081_vm0, %v6082_v11  ;;  %5136 = vmatprep.mubr.msk.f32.mxu0 %vm6081_vm0, %v6082_v11 }
 0x142   : > { %5568 = vmatpush3.bf16.msra.mxu1 %v7067_v30  ;;  %5748 = vmatpush3.bf16.msra.mxu0 %v6509_v50  ;;  %v7101_v50 = vpop.permute.xlu0 %2743 }
 0x143   : > { %5569 = vmatprep.subr.bf16.mxu1 %v6080_v3  ;;  %5749 = vmatprep.subr.bf16.mxu0 %v6080_v3 }
 0x146   : > { %5571 = vmatpush3.bf16.msra.mxu1 %v7083_v29  ;;  %5751 = vmatpush3.bf16.msra.mxu0 %v6533_v57 }
 0x147   : > { %5572 = vmatprep.subr.bf16.mxu1 %v6080_v3  ;;  %5752 = vmatprep.subr.bf16.mxu0 %v6080_v3 }
 0x14a   : > { %5574 = vmatpush3.bf16.msra.mxu1 %v7095_v49  ;;  %5754 = vmatpush3.bf16.msra.mxu0 %v6555_v7 }
 0x14b   : > { %5599 = vmatprep.subr.bf16.mxu1 %v6080_v3  ;;  %5767 = vmatprep.subr.bf16.mxu0 %v6080_v3 }
 0x14d   : > { %4852 = vmatmul.mubr.msk.f32.vlgmr.msra.gmra.mrb[2].mxu1 %vm306_vm1, %v6657_v17  ;;  %5137 = vmatmul.mubr.msk.f32.vlgmr.msra.gmra.mrb[2].mxu0 %vm306_vm1, %v7101_v50 }
 0x14e   : > { %5601 = vmatpush3.bf16.msra.mxu1 %v6395_v61  ;;  %5769 = vmatpush3.bf16.msra.mxu0 %v6577_v24  ;;  %v7127_v61 = vpop.permute.xlu1 %2889 }
 0x14f   : > { %5602 = vmatprep.subr.bf16.mxu1 %v6080_v3  ;;  %5770 = vmatprep.subr.bf16.mxu0 %v6080_v3 }
 0x150   : > { %4908 = vmatprep.mubr.msk.f32.mxu1 %vm6081_vm0, %v6082_v11  ;;  %5174 = vmatprep.mubr.msk.f32.mxu0 %vm6081_vm0, %v6082_v11 }
 0x152   : > { %5604 = vmatpush3.bf16.msra.mxu1 %v6419_v5  ;;  %5772 = vmatpush3.bf16.msra.mxu0 %v6601_v44  ;;  %v3050_v5 = vld [vmem:[%s7562_s3 + $0x10] sm:$0xff]  ;;  %v3052_v44 = vld [vmem:[%s7562_s3 + $0x20] sm:$0xff] }
 0x153   : > { %5605 = vmatprep.subr.bf16.mxu1 %v6080_v3  ;;  %5773 = vmatprep.subr.bf16.mxu0 %v6080_v3 }
 0x156   : > { %5607 = vmatpush3.bf16.msra.mxu1 %v6443_v15  ;;  %5775 = vmatpush3.bf16.msra.mxu0 %v6625_v52  ;;  %v3053_v52 = vld [vmem:[%s7562_s3 + $0x28] sm:$0xff] }
 0x157   : > { %5608 = vmatprep.subr.bf16.mxu1 %v6080_v3  ;;  %5776 = vmatprep.subr.bf16.mxu0 %v6080_v3 }
 0x15a   : > { %5610 = vmatpush3.bf16.msra.mxu1 %v6463_v25  ;;  %5778 = vmatpush3.bf16.msra.mxu0 %v6645_v9  ;;  %v3051_v25 = vld [vmem:[%s7562_s3 + $0x18] sm:$0xff]  ;;  %v5798_v9 = vpack.c.bf16 %v3053_v52, %v3052_v44  ;;  %v4074_v52 = vld [vmem:[%s7562_s3 + $0x120] sm:$0xff] }
 0x15b   : > { %5611 = vmatprep.subr.bf16.mxu1 %v6080_v3  ;;  %5791 = vmatprep.subr.bf16.mxu0 %v6080_v3 }
 0x15d   : > { %4909 = vmatmul.mubr.msk.f32.vlgmr.msra.gmra.mrb[4].mxu1 %vm306_vm1, %v6319_v40  ;;  %5175 = vmatmul.mubr.msk.f32.vlgmr.msra.gmra.mrb[2].mxu0 %vm306_vm1, %v7127_v61  ;;  %v3048_v40 = vld [vmem:[%s7562_s3] sm:$0xff] }
 0x15e   : > { %5613 = vmatpush3.bf16.msra.mxu1 %v6483_v37  ;;  %4927 = vmatprep.mubr.msk.f32.mxu1 %vm6081_vm0, %v6082_v11  ;;  %v5795_v37 = vpack.c.bf16 %v3051_v25, %v3050_v5  ;;  %v4066_v5 = vld [vmem:[%s7562_s3 + $0xe8] sm:$0xff]  ;;  %v4067_v25 = vld [vmem:[%s7562_s3 + $0xf0] sm:$0xff] }
 0x15f   : > { %5614 = vmatprep.subr.bf16.mxu1 %v6080_v3  ;;  %5212 = vmatprep.mubr.msk.f32.mxu0 %vm6081_vm0, %v6082_v11 }
 0x162   : > { %5616 = vmatpush3.bf16.msra.mxu1 %v6507_v47  ;;  %v6015_v47 = vld [vmem:[%s6223_s21 + $0x11] sm:$0xff]  ;;  %s7517_s21 = scalar_lea.hbm %s7566_s7, %s4107_s29 }
 0x163   : > { %5617 = vmatprep.subr.bf16.mxu1 %v6080_v3 }
 0x166   : > { %5619 = vmatpush3.bf16.msra.mxu1 %v6531_v56 }
 0x167   : > { %5620 = vmatprep.subr.bf16.mxu1 %v6080_v3 }
 0x16a   : > { %5622 = vmatpush3.bf16.msra.mxu1 %v6553_v2 }
 0x16b   : > { %5635 = vmatprep.subr.bf16.mxu1 %v6080_v3 }
 0x16d   : > { %4928 = vmatmul.mubr.msk.f32.vlgmr.msra.gmra.mrb[4].mxu1 %vm306_vm1, %v6236_v18 }
 0x16e   : > { %5637 = vmatpush3.bf16.msra.mxu1 %v6659_v31  ;;  %4965 = vmatprep.mubr.msk.f32.mxu1 %vm6081_vm0, %v6082_v11 }
 0x16f   : > { %5638 = vmatprep.subr.bf16.mxu1 %v6080_v3 }
 0x172   : > { %5640 = vmatpush3.bf16.msra.mxu1 %v6675_v36  ;;  %v3054_v36 = vld [vmem:[%s7562_s3 + $0x30] sm:$0xff] }
 0x173   : > { %5641 = vmatprep.subr.bf16.mxu1 %v6080_v3 }
 0x176   : > { %5643 = vmatpush3.bf16.msra.mxu1 %v6691_v4  ;;  %v3055_v4 = vld [vmem:[%s7562_s3 + $0x38] sm:$0xff] }
 0x177   : > { %5644 = vmatprep.subr.bf16.mxu1 %v6080_v3 }
 0x17a   : > { %5646 = vmatpush3.bf16.msra.mxu1 %v6703_v53  ;;  %v5801_v53 = vpack.c.bf16 %v3055_v4, %v3054_v36  ;;  %v4077_v36 = vld [vmem:[%s7562_s3 + $0x138] sm:$0xff] }
 0x17b   : > { %5659 = vmatprep.subr.bf16.mxu1 %v6080_v3 }
 0x17d   : > { %4966 = vmatmul.mubr.msk.f32.vlgmr.msra.gmra.mrb[4].mxu1 %vm306_vm1, %v6393_v60  ;;  %v3049_v60 = vld [vmem:[%s7562_s3 + $0x8] sm:$0xff] }
 0x17e   : > { %5661 = vmatpush3.bf16.msra.mxu1 %v6771_v19  ;;  %5003 = vmatprep.mubr.msk.f32.mxu1 %vm6081_vm0, %v6082_v11  ;;  %v5792_v15 = vpack.c.bf16 %v3049_v60, %v3048_v40  ;;  %v3712_v19 = vld [vmem:[%s7564_s5] sm:$0xff] }
 0x17f   : > { %5662 = vmatprep.subr.bf16.mxu1 %v6080_v3  ;;  %v4065_v60 = vld [vmem:[%s7562_s3 + $0xe0] sm:$0xff] }
 0x180   : > { %5793 = vmatpush3.bf16.msra.mxu0 %v5792_v15  ;;  %v5834_v15 = vpack.c.bf16 %v4066_v5, %v4065_v60 }
 0x181   : > { %5794 = vmatprep.subr.bf16.mxu0 %v6080_v3 }
 0x182   : > { %5664 = vmatpush3.bf16.msra.mxu1 %v6787_v54  ;;  %v3713_v54 = vld [vmem:[%s7564_s5 + $0x8] sm:$0xff] }
 0x183   : > { %5665 = vmatprep.subr.bf16.mxu1 %v6080_v3 }
 0x184   : > { %5796 = vmatpush3.bf16.msra.mxu0 %v5795_v37  ;;  %v4068_v37 = vld [vmem:[%s7562_s3 + $0xf8] sm:$0xff] }
 0x185   : > { %5797 = vmatprep.subr.bf16.mxu0 %v6080_v3 }
 0x186   : > { %5667 = vmatpush3.bf16.msra.mxu1 %v6803_v23  ;;  %v5888_v23 = vpack.c.bf16 %v3713_v54, %v3712_v19  ;;  %v4080_v19 = vld [vmem:[%s7562_s3 + $0x148] sm:$0xff] }
 0x187   : > { %5668 = vmatprep.subr.bf16.mxu1 %v6080_v3 }
 0x188   : > { %5799 = vmatpush3.bf16.msra.mxu0 %v5798_v9  ;;  %v4075_v9 = vld [vmem:[%s7562_s3 + $0x128] sm:$0xff] }
 0x189   : > { %5800 = vmatprep.subr.bf16.mxu0 %v6080_v3 }
 0x18a   : > { %5670 = vmatpush3.bf16.msra.mxu1 %v6815_v63 }
 0x18b   : > { %5683 = vmatprep.subr.bf16.mxu1 %v6080_v3 }
 0x18c   : > { %5802 = vmatpush3.bf16.msra.mxu0 %v5801_v53  ;;  %v4079_v53 = vld [vmem:[%s7562_s3 + $0x140] sm:$0xff] }
 0x18d   : > { %5004 = vmatmul.mubr.msk.f32.vlgmr.msra.gmra.mrb[4].mxu1 %vm306_vm1, %v6268_v26  ;;  %5803 = vmatprep.subr.bf16.mxu0 %v6080_v3  ;;  %v5852_v54 = vpack.c.bf16 %v4080_v19, %v4079_v53 }
 0x18e   : > { %5685 = vmatpush3.bf16.msra.mxu1 %v6827_v1  ;;  %5041 = vmatprep.mubr.msk.f32.mxu1 %vm6081_vm0, %v6082_v11 }
 0x18f   : > { %5686 = vmatprep.subr.bf16.mxu1 %v6080_v3 }
 0x192   : > { %5688 = vmatpush3.bf16.msra.mxu1 %v6843_v0 }
 0x193   : > { %5689 = vmatprep.subr.bf16.mxu1 %v6080_v3 }
 0x196   : > { %5691 = vmatpush3.bf16.msra.mxu1 %v6859_v59  ;;  %v4041_v59 = vld [vmem:[%s7561_s2] ss:$0 sm:$0xff] }
 0x197   : > { %5692 = vmatprep.subr.bf16.mxu1 %v6080_v3 }
 0x19a   : > { %5694 = vmatpush3.bf16.msra.mxu1 %v6871_v46 }
 0x19b   : > { %5707 = vmatprep.subr.bf16.mxu1 %v6080_v3 }
 0x19d   : > { %5042 = vmatmul.mubr.msk.f32.vlgmr.msra.gmra.mrb[4].mxu1 %vm306_vm1, %v6573_v22 }
 0x19e   : > { %5709 = vmatpush3.bf16.msra.mxu1 %v6883_v12  ;;  %5079 = vmatprep.mubr.msk.f32.mxu1 %vm6081_vm0, %v6082_v11  ;;  %v4043_v12 = vld [vmem:[%s7562_s3 + $0x40] sm:$0xff] }
 0x19f   : > { %5710 = vmatprep.subr.bf16.mxu1 %v6080_v3 }
 0x1a0   : > { %v1664_v18 = vpop.f32.mrb[0].mxu0 }
 0x1a1   : > { %v4834_v26 = vpop.f32.mrb[1].mxu0 }
 0x1a2   : > { %5712 = vmatpush3.bf16.msra.mxu1 %v6899_v33  ;;  %v4044_v33 = vld [vmem:[%s7562_s3 + $0x48] sm:$0xff]  ;;  %v4064_v26 = vld [vmem:[%s7562_s3 + $0xd8] sm:$0xff] }
 0x1a3   : > { %5713 = vmatprep.subr.bf16.mxu1 %v6080_v3 }
 0x1a6   : > { %5715 = vmatpush3.bf16.msra.mxu1 %v6915_v8 }
 0x1a7   : > { %5716 = vmatprep.subr.bf16.mxu1 %v6080_v3 }
 0x1aa   : > { %5718 = vmatpush3.bf16.msra.mxu1 %v6927_v14  ;;  %v5804_v14 = vpack.c.bf16 %v4044_v33, %v4043_v12  ;;  %v4085_v33 = vld [vmem:[%s7562_s3 + $0x170] sm:$0xff] }
 0x1ab   : > { %5731 = vmatprep.subr.bf16.mxu1 %v6080_v3 }
 0x1ad   : > { %5080 = vmatmul.mubr.msk.f32.vlgmr.msra.gmra.mrb[4].mxu1 %vm306_vm1, %v6657_v17 }
 0x1ae   : > { %5733 = vmatpush3.bf16.msra.mxu1 %v6939_v42  ;;  %5117 = vmatprep.mubr.msk.f32.mxu1 %vm6081_vm0, %v6082_v11 }
 0x1af   : > { %5734 = vmatprep.subr.bf16.mxu1 %v6080_v3 }
 0x1b2   : > { %5736 = vmatpush3.bf16.msra.mxu1 %v6955_v28  ;;  %v4045_v28 = vld [vmem:[%s7562_s3 + $0x50] sm:$0xff] }
 0x1b3   : > { %5737 = vmatprep.subr.bf16.mxu1 %v6080_v3 }
 0x1b6   : > { %5739 = vmatpush3.bf16.msra.mxu1 %v6971_v35  ;;  %v4046_v35 = vld [vmem:[%s7562_s3 + $0x58] sm:$0xff] }
 0x1b7   : > { %5740 = vmatprep.subr.bf16.mxu1 %v6080_v3 }
 0x1ba   : > { %5742 = vmatpush3.bf16.msra.mxu1 %v6983_v58  ;;  %v5807_v58 = vpack.c.bf16 %v4046_v35, %v4045_v28  ;;  %v4088_v28 = vld [vmem:[%s7562_s3 + $0x180] sm:$0xff]  ;;  %v4089_v35 = vld [vmem:[%s7562_s3 + $0x188] sm:$0xff] }
 0x1bb   : > { %5755 = vmatprep.subr.bf16.mxu1 %v6080_v3 }
 0x1bd   : > { %5118 = vmatmul.mubr.msk.f32.vlgmr.msra.gmra.mrb[4].mxu1 %vm306_vm1, %v6015_v47  ;;  %v5837_v47 = vpack.c.bf16 %v4068_v37, %v4067_v25  ;;  %v3716_v25 = vld [vmem:[%s7565_s6] sm:$0x1] }
 0x1be   : > { %5757 = vmatpush3.bf16.msra.mxu1 %v6995_v39  ;;  %5155 = vmatprep.mubr.msk.f32.mxu1 %vm6081_vm0, %v6082_v11  ;;  %v4047_v39 = vld [vmem:[%s7562_s3 + $0x60] sm:$0xff] }
 0x1bf   : > { %5758 = vmatprep.subr.bf16.mxu1 %v6080_v3 }
 0x1c0   : > { %v844_v56 = vpop.f32.mrb[0].mxu1 }
 0x1c1   : > { %v5893_v57 = vadd.f32 %v1664_v18, %v844_v56  ;;  %v4644_v2 = vpop.f32.mrb[1].mxu1  ;;  %v4063_v18 = vld [vmem:[%s7562_s3 + $0xd0] sm:$0xff]  ;;  %v4070_v56 = vld [vmem:[%s7562_s3 + $0x100] sm:$0xff] }
 0x1c2   : > { %5760 = vmatpush3.bf16.msra.mxu1 %v7011_v55  ;;  %v5810_v55 = vpack.c.bf16 %v4048_v10, %v4047_v39  ;;  %v5831_v40 = vpack.c.bf16 %v4064_v26, %v4063_v18  ;;  %v4090_v10 = vld [vmem:[%s7562_s3 + $0x190] sm:$0xff]  ;;  %v3715_v26 = vld [vmem:[%s7564_s5 + $0x18] sm:$0xff] }
 0x1c3   : > { %5761 = vmatprep.subr.bf16.mxu1 %v6080_v3  ;;  %v3714_v18 = vld [vmem:[%s7564_s5 + $0x10] sm:$0xff] }
 0x1c6   : > { %5763 = vmatpush3.bf16.msra.mxu1 %v7027_v62  ;;  %v5813_v62 = vpack.c.bf16 %v4050_v13, %v4049_v41  ;;  %v4092_v13 = vld [vmem:[%s7562_s3 + $0x1a0] sm:$0xff] }
 0x1c7   : > { %5764 = vmatprep.subr.bf16.mxu1 %v6080_v3 }
 0x1ca   : > { %5766 = vmatpush3.bf16.msra.mxu1 %v7039_v45  ;;  %v5816_v45 = vpack.c.bf16 %v4053_v21, %v4052_v32  ;;  %v4094_v21 = vld [vmem:[%s7562_s3 + $0x1b0] sm:$0xff] }
 0x1cb   : > { %5779 = vmatprep.subr.bf16.mxu1 %v6080_v3 }
 0x1cd   : > { %5156 = vmatmul.mubr.msk.f32.vlgmr.msra.gmra.mrb[4].mxu1 %vm306_vm1, %v7101_v50 }
 0x1ce   : > { %5781 = vmatpush3.bf16.msra.mxu1 %v7051_v27  ;;  %5193 = vmatprep.mubr.msk.f32.mxu1 %vm6081_vm0, %v6082_v11  ;;  %v4055_v27 = vld [vmem:[%s7562_s3 + $0x98] sm:$0xff] }
 0x1cf   : > { %5782 = vmatprep.subr.bf16.mxu1 %v6080_v3  ;;  %v5819_v16 = vpack.c.bf16 %v4055_v27, %v4054_v48  ;;  %v4097_v48 = vld [vmem:[%s7562_s3 + $0x1c0] sm:$0xff]  ;;  %v4098_v27 = vld [vmem:[%s7562_s3 + $0x1c8] sm:$0xff] }
 0x1d2   : > { %5784 = vmatpush3.bf16.msra.mxu1 %v7067_v30  ;;  %v4057_v30 = vld [vmem:[%s7562_s3 + $0xa8] sm:$0xff] }
 0x1d3   : > { %5785 = vmatprep.subr.bf16.mxu1 %v6080_v3  ;;  %v5822_v34 = vpack.c.bf16 %v4057_v30, %v4056_v51  ;;  %v4099_v30 = vld [vmem:[%s7562_s3 + $0x1d0] sm:$0xff] }
 0x1d6   : > { %5787 = vmatpush3.bf16.msra.mxu1 %v7083_v29  ;;  %v4059_v29 = vld [vmem:[%s7562_s3 + $0xb8] sm:$0xff] }
 0x1d7   : > { %5788 = vmatprep.subr.bf16.mxu1 %v6080_v3  ;;  %v5825_v38 = vpack.c.bf16 %v4059_v29, %v4058_v43  ;;  %v4101_v29 = vld [vmem:[%s7562_s3 + $0x1e0] sm:$0xff] }
 0x1da   : > { %5790 = vmatpush3.bf16.msra.mxu1 %v7095_v49  ;;  %v4062_v49 = vld [vmem:[%s7562_s3 + $0xc8] sm:$0xff] }
 0x1db   : > { %5887 = vmatprep.subr.bf16.mxu1 %v6080_v3  ;;  %v5828_v50 = vpack.c.bf16 %v4062_v49, %v4061_v20  ;;  %v4103_v49 = vld [vmem:[%s7562_s3 + $0x1f0] sm:$0xff] }
 0x1dd   : > { %5194 = vmatmul.mubr.msk.f32.vlgmr.msra.gmra.mrb[4].mxu1 %vm306_vm1, %v7127_v61 }
 0x1de   : > { %5356 = vmatprep.mubr.msk.f32.mxu1 %vm6081_vm0, %v6082_v11  ;;  %5889 = vmatpush3.bf16.msra.mxu1 %v5888_v23 }
 0x1df   : > { %5890 = vmatprep.subr.bf16.mxu1 %v6080_v3 }
 0x220   : > { %v1744_v7 = vpop.f32.mrb[2].mxu1 }
 0x221   : > { %v3035_v22 = vmax.f32 %v5893_v57, %v1744_v7  ;;  %v4853_v24 = vpop.f32.mrb[3].mxu1  ;;  %v4071_v57 = vld [vmem:[%s7562_s3 + $0x108] sm:$0xff] }
 0x222   : > { %v5840_v2 = vpack.c.bf16 %v4071_v57, %v4070_v56  ;;  %v4073_v24 = vld [vmem:[%s7562_s3 + $0x118] sm:$0xff] }
 0x230   : > { %v2959_v17 = vpop.f32.mrb[2].mxu0 }
 0x231   : > { %v5176_v31 = vpop.f32.mrb[3].mxu0 }
 0x232   : > { %v4076_v31 = vld [vmem:[%s7562_s3 + $0x130] sm:$0xff] }
 0x233   : > { %v5849_v4 = vpack.c.bf16 %v4077_v36, %v4076_v31 }
 0x2b0   : > { %v3030_v63 = vpop.f32.mrb[4].mxu1 }
 0x2b1   : > { %v3036_v1 = vmax.f32 %v2959_v17, %v3030_v63  ;;  %v5195_v0 = vpop.f32.mrb[5].mxu1  ;;  %v5846_v17 = vpack.c.bf16 %v4075_v9, %v4074_v52  ;;  %v4081_v63 = vld [vmem:[%s7562_s3 + $0x150] sm:$0xff] }
 0x2b3   : > { %v3037_v46 = vmax.f32 %v3035_v22, %v3036_v1  ;;  %v4072_v22 = vld [vmem:[%s7562_s3 + $0x110] sm:$0xff]  ;;  %v4082_v1 = vld [vmem:[%s7562_s3 + $0x158] sm:$0xff] }
 0x2b4   : > { %v5843_v44 = vpack.c.bf16 %v4073_v24, %v4072_v22  ;;  %v5855_v0 = vpack.c.bf16 %v4082_v1, %v4081_v63 }
 0x2b5   : > { %v3045_v8 = vadd.f32 %v4041_v59, %v3037_v46  ;;  %v4083_v59 = vld [vmem:[%s7562_s3 + $0x160] sm:$0xff]  ;;  %v4084_v46 = vld [vmem:[%s7562_s3 + $0x168] sm:$0xff] }
 0x2b6   : > { %v5858_v12 = vpack.c.bf16 %v4084_v46, %v4083_v59 }
 0x2b7   : > { %v7279_v42 = vmax.f32 %v3045_v8, 0.0  ;;  %v4086_v8 = vld [vmem:[%s7562_s3 + $0x178] sm:$0xff] }
 0x2b9   : > { %5213 = vmatmul.mubr.msk.f32.vlgmr.msra.gmra.mrb[4].mxu0 %vm306_vm1, %v7279_v42  ;;  %v3139_v6 = vrot.slane %v7279_v42, 1  ;;  %v3222_v61 = vrot.slane %v7279_v42, 2  ;;  %v3305_v7 = vrot.slane %v7279_v42, 3  ;;  %v3388_v23 = vrot.slane %v7279_v42, 4 }
 0x2ba   : > { %5805 = vmatpush3.bf16.msra.mxu0 %v5804_v14  ;;  %5231 = vmatprep.mubr.msk.f32.mxu0 %vm6081_vm0, %v6082_v11  ;;  %v5861_v14 = vpack.c.bf16 %v4086_v8, %v4085_v33  ;;  %v3471_v39 = vrot.slane %v7279_v42, 5  ;;  %v3554_v51 = vrot.slane %v7279_v42, 6 }
 0x2bb   : > { %5806 = vmatprep.subr.bf16.mxu0 %v6080_v3 }
 0x2be   : > { %5808 = vmatpush3.bf16.msra.mxu0 %v5807_v58  ;;  %v5864_v58 = vpack.c.bf16 %v4089_v35, %v4088_v28 }
 0x2bf   : > { %5809 = vmatprep.subr.bf16.mxu0 %v6080_v3 }
 0x2c2   : > { %5811 = vmatpush3.bf16.msra.mxu0 %v5810_v55  ;;  %v4091_v55 = vld [vmem:[%s7562_s3 + $0x198] sm:$0xff] }
 0x2c3   : > { %5812 = vmatprep.subr.bf16.mxu0 %v6080_v3  ;;  %v5867_v41 = vpack.c.bf16 %v4091_v55, %v4090_v10 }
 0x2c6   : > { %5814 = vmatpush3.bf16.msra.mxu0 %v5813_v62  ;;  %v4093_v62 = vld [vmem:[%s7562_s3 + $0x1a8] sm:$0xff] }
 0x2c7   : > { %5815 = vmatprep.subr.bf16.mxu0 %v6080_v3  ;;  %v5870_v32 = vpack.c.bf16 %v4093_v62, %v4092_v13 }
 0x2c9   : > { %5232 = vmatmul.mubr.msk.f32.vlgmr.msra.gmra.mrb[4].mxu0 %vm306_vm1, %v3139_v6 }
 0x2ca   : > { %5817 = vmatpush3.bf16.msra.mxu0 %v5816_v45  ;;  %5250 = vmatprep.mubr.msk.f32.mxu0 %vm6081_vm0, %v6082_v11  ;;  %v4095_v45 = vld [vmem:[%s7562_s3 + $0x1b8] sm:$0xff] }
 0x2cb   : > { %5818 = vmatprep.subr.bf16.mxu0 %v6080_v3  ;;  %v5873_v6 = vpack.c.bf16 %v4095_v45, %v4094_v21 }
 0x2ce   : > { %5820 = vmatpush3.bf16.msra.mxu0 %v5819_v16  ;;  %v5876_v16 = vpack.c.bf16 %v4098_v27, %v4097_v48 }
 0x2cf   : > { %5821 = vmatprep.subr.bf16.mxu0 %v6080_v3 }
 0x2d2   : > { %5823 = vmatpush3.bf16.msra.mxu0 %v5822_v34  ;;  %v4100_v34 = vld [vmem:[%s7562_s3 + $0x1d8] sm:$0xff] }
 0x2d3   : > { %5824 = vmatprep.subr.bf16.mxu0 %v6080_v3  ;;  %v5879_v43 = vpack.c.bf16 %v4100_v34, %v4099_v30 }
 0x2d6   : > { %5826 = vmatpush3.bf16.msra.mxu0 %v5825_v38  ;;  %v4102_v38 = vld [vmem:[%s7562_s3 + $0x1e8] sm:$0xff] }
 0x2d7   : > { %5827 = vmatprep.subr.bf16.mxu0 %v6080_v3  ;;  %v5882_v20 = vpack.c.bf16 %v4102_v38, %v4101_v29 }
 0x2d9   : > { %5251 = vmatmul.mubr.msk.f32.vlgmr.msra.gmra.mrb[4].mxu0 %vm306_vm1, %v3222_v61  ;;  %v3637_v61 = vrot.slane %v7279_v42, 7 }
 0x2da   : > { %5829 = vmatpush3.bf16.msra.mxu0 %v5828_v50  ;;  %5269 = vmatprep.mubr.msk.f32.mxu0 %vm6081_vm0, %v6082_v11 }
 0x2db   : > { %5830 = vmatprep.subr.bf16.mxu0 %v6080_v3 }
 0x2de   : > { %5832 = vmatpush3.bf16.msra.mxu0 %v5831_v40  ;;  %v5891_v40 = vpack.c.bf16 %v3715_v26, %v3714_v18 }
 0x2df   : > { %5833 = vmatprep.subr.bf16.mxu0 %v6080_v3 }
 0x2e0   : > { %5892 = vmatpush3.bf16.msra.mxu1 %v5891_v40 }
 0x2e2   : > { %5835 = vmatpush3.bf16.msra.mxu0 %v5834_v15 }
 0x2e3   : > { %5836 = vmatprep.subr.bf16.mxu0 %v6080_v3 }
 0x2e6   : > { %5838 = vmatpush3.bf16.msra.mxu0 %v5837_v47 }
 0x2e7   : > { %5839 = vmatprep.subr.bf16.mxu0 %v6080_v3 }
 0x2e9   : > { %5270 = vmatmul.mubr.msk.f32.vlgmr.msra.gmra.mrb[4].mxu0 %vm306_vm1, %v3305_v7 }
 0x2ea   : > { %5841 = vmatpush3.bf16.msra.mxu0 %v5840_v2  ;;  %5288 = vmatprep.mubr.msk.f32.mxu0 %vm6081_vm0, %v6082_v11 }
 0x2eb   : > { %5842 = vmatprep.subr.bf16.mxu0 %v6080_v3 }
 0x2ee   : > { %5844 = vmatpush3.bf16.msra.mxu0 %v5843_v44 }
 0x2ef   : > { %5845 = vmatprep.subr.bf16.mxu0 %v6080_v3 }
 0x2f2   : > { %5847 = vmatpush3.bf16.msra.mxu0 %v5846_v17 }
 0x2f3   : > { %5848 = vmatprep.subr.bf16.mxu0 %v6080_v3 }
 0x2f6   : > { %5850 = vmatpush3.bf16.msra.mxu0 %v5849_v4 }
 0x2f7   : > { %5851 = vmatprep.subr.bf16.mxu0 %v6080_v3 }
 0x2f9   : > { %5289 = vmatmul.mubr.msk.f32.vlgmr.msra.gmra.mrb[4].mxu0 %vm306_vm1, %v3388_v23 }
 0x2fa   : > { %5853 = vmatpush3.bf16.msra.mxu0 %v5852_v54  ;;  %5307 = vmatprep.mubr.msk.f32.mxu0 %vm6081_vm0, %v6082_v11 }
 0x2fb   : > { %5854 = vmatprep.subr.bf16.mxu0 %v6080_v3 }
 0x2fe   : > { %5856 = vmatpush3.bf16.msra.mxu0 %v5855_v0 }
 0x2ff   : > { %5857 = vmatprep.subr.bf16.mxu0 %v6080_v3 }
 0x302   : > { %5859 = vmatpush3.bf16.msra.mxu0 %v5858_v12 }
 0x303   : > { %5860 = vmatprep.subr.bf16.mxu0 %v6080_v3 }
 0x306   : > { %5862 = vmatpush3.bf16.msra.mxu0 %v5861_v14 }
 0x307   : > { %5863 = vmatprep.subr.bf16.mxu0 %v6080_v3 }
 0x309   : > { %5308 = vmatmul.mubr.msk.f32.vlgmr.msra.gmra.mrb[4].mxu0 %vm306_vm1, %v3471_v39 }
 0x30a   : > { %5865 = vmatpush3.bf16.msra.mxu0 %v5864_v58  ;;  %5326 = vmatprep.mubr.msk.f32.mxu0 %vm6081_vm0, %v6082_v11 }
 0x30b   : > { %5866 = vmatprep.subr.bf16.mxu0 %v6080_v3 }
 0x30e   : > { %5868 = vmatpush3.bf16.msra.mxu0 %v5867_v41 }
 0x30f   : > { %5869 = vmatprep.subr.bf16.mxu0 %v6080_v3 }
 0x312   : > { %5871 = vmatpush3.bf16.msra.mxu0 %v5870_v32 }
 0x313   : > { %5872 = vmatprep.subr.bf16.mxu0 %v6080_v3 }
 0x316   : > { %5874 = vmatpush3.bf16.msra.mxu0 %v5873_v6 }
 0x317   : > { %5875 = vmatprep.subr.bf16.mxu0 %v6080_v3 }
 0x319   : > { %5327 = vmatmul.mubr.msk.f32.vlgmr.msra.gmra.mrb[4].mxu0 %vm306_vm1, %v3554_v51 }
 0x31a   : > { %5877 = vmatpush3.bf16.msra.mxu0 %v5876_v16  ;;  %5345 = vmatprep.mubr.msk.f32.mxu0 %vm6081_vm0, %v6082_v11  ;;  %v4104_v11 = vld [vmem:[%s7562_s3 + $0x1f8] sm:$0xff] }
 0x31b   : > { %5878 = vmatprep.subr.bf16.mxu0 %v6080_v3  ;;  %v5885_v50 = vpack.c.bf16 %v4104_v11, %v4103_v49 }
 0x31e   : > { %5880 = vmatpush3.bf16.msra.mxu0 %v5879_v43 }
 0x31f   : > { %5881 = vmatprep.subr.bf16.mxu0 %v6080_v3 }
 0x322   : > { %5883 = vmatpush3.bf16.msra.mxu0 %v5882_v20 }
 0x323   : > { %5884 = vmatprep.subr.bf16.mxu0 %v6080_v3  ;;  %v3047_v3 = vld [vmem:[%s7563_s4] sm:$0x1] }
 0x326   : > { %5886 = vmatpush3.bf16.msra.mxu0 %v5885_v50 }
 0x329   : > { %5346 = vmatmul.mubr.msk.f32.vlgmr.msra.gmra.mrb[4].mxu0 %vm306_vm1, %v3637_v61 }
 0x3fc   : > { %v3706_v60 = vpop.f32.mrb[4].mxu0 }
 0x3fd   : > { %v5894_v5 = vadd.f32 %v3706_v60, %v3047_v3  ;;  %v5347_v15 = vpop.f32.mrb[5].mxu0 }
 0x3ff   : > { %v3711_v42 = vmax.f32 %v5894_v5, 0.0 }
 0x401   : > { %5357 = vmatmul.mubr.msk.f32.vlgmr.msra.gmra.mrb[6].mxu1 %vm3717_vm2, %v3711_v42 }
 0x4d4   : > { %v3787_v37 = vpop.f32.mrb[6].mxu1 }
 0x4d5   : > { %v3788_v47 = vadd.f32 %v3787_v37, %v3716_v25  ;;  %v5358_v56 = vpop.f32.mrb[7].mxu1 }
 0x4d7   : > { %3792 = vst.msk [vmem:[%s270_s8] sm:$0x1] %vm3791_vm3, %v3788_v47 }
 0x4d8   : > { %6029 = shalt.err (!%p6026_p3)
}
 0x4d9   : > { %s6030_s14 = scalar_lea.hbm %s7517_s21, 16  ;;  %s6034_s23 = scalar_lea.hbm %s7566_s7, 32 }
 0x4da   : > { %p6031_p4 = scmp.ne.s32.totalorder %s7517_s21, %s6030_s14  ;;  %p6035_p9 = scmp.lt.u32.totalorder %s7517_s21, %s7566_s7 }
 0x4db   : > { %p6036_p10 = scmp.lt.u32.totalorder %s6034_s23, %s6030_s14  ;;  %p6038_p12 = scmp.lt.u32.totalorder %s6030_s14, %s7517_s21 }
 0x4dc   : > { %p6032_p7 = pnand %p6031_p4, %p6164_p5 }
 0x4dd   : > { %p6037_p11 = por %p6036_p10, %p6035_p9 }
 0x4de   : > { %p6033_p8 = pneg %p6032_p7 }
 0x4df   : > { %p6039_p13 = por %p6038_p12, %p6037_p11 }
 0x4e1   : > { %p6040_p0 = pnand %p6039_p13, %p6033_p8 }
 0x4e3   : > { %6043 = shalt.err (!%p6040_p0)
}
 0x4e4   : > { %5971 = dma.vmem_to_hbm [thread:$0]  (%p6164_p5), %s7519_s9, 16, %s7517_s21, %s3794_s16  }
 0x4e5 PF: > { %p5977_p1 = scmp.ge.s32.totalorder %s6078_s27, 2  ;;  %s3818_s13 = sand.u32 1, %s6066_s24  }
 0x4e6   : > { %s3819_s15 = scalar_lea.sflag [#allocation3], %s3818_s13 }
 0x4e7   : > { %p5974_p2 = pnand %p5977_p1, %p6168_p6 }
 0x4e9   : > { %6061 = dma.done.wait (!%p5974_p2), %s3819_s15, 16  }
 0x4ea   : > { %6063 = vsyncadd (!%p5974_p2), %s3819_s15, 4294967280  ;;  %p17_p3 = scmp.ge.s32.totalorder %s6151_s30, 4   ;;  %s7569_s24 = smov %s6070_s25 }
 0x4eb   : > { %s7570_s25 = smov %s6074_s26  ;;  %s7571_s26 = smov %s6162_s10 }
 0x4ec   : > { %s7572_s27 = smov %s6151_s30  ;;  %19 = sbr.rel (!%p17_p3) target bundleno = 3 (0x3), region = 108 }
 0x4f3   :  { %3823 = vsyncpa [#allocation3], 1 }
 0x4f4   :  { %3825 = vsyncpa [#allocation3 + $0x1], 1 }

</bundles_post_ra>
